<compile_context>
chip_gen: v5e
topology: v5e:2x2
jax: 0.10.0
libtpu: 0.0.40
codegen_flags: <defaults>
</compile_context>

<pallas_src>
import functools

import numpy as np
import jax
import jax.numpy as jnp
from jax.experimental import pallas as pl
from jax.experimental.pallas import tpu as pltpu

BN_EPS = 1e-5
KSIZE = 5      # Conv1d kernel size
PAD = 2        # Conv1d padding ('same' for k=5)
HALO = 8       # sublane-aligned interior offset inside padded conv buffers
K1 = 8         # conv1 host-side im2col taps padded 5 -> 8 columns


# ---------------------------------------------------------------------------
# Fused kernel: conv1 + conv2 + conv3 (+BN+ReLU+pool each) + MLP + softmax
# ---------------------------------------------------------------------------
def _fused_model3_kernel(x1_ref, w1_ref, o1_ref,
                         w2_ref, o2_ref, w3_ref, o3_ref,
                         w1c_ref, bc1_ref, wc2_ref, bc2_ref, wc3_ref, bc3_ref,
                         prob_ref,
                         act1_ref, pad2_ref, act2_ref, pad3_ref, act3_ref,
                         *, NB, L0):
    # Activation layout: 2-D (rows, channels), rows ordered (batch, position).
    # padX_ref: (HALO + rows + HALO, Cin); interior starts at sublane-aligned
    # row HALO.  Halo rows are never written: every read of a halo row is an
    # out-of-range tap and is masked by jnp.where below.
    R1 = NB * L0

    def pool_into(act_ref, next_pad_ref, rows):
        # MaxPool1d(kernel=2, stride=2): pairwise max of adjacent rows,
        # stored at the aligned interior offset of the next padded buffer.
        half = rows // 2
        ev = act_ref[pl.ds(0, half, 2), :]
        od = act_ref[pl.ds(1, half, 2), :]
        next_pad_ref[pl.ds(HALO, half), :] = jnp.maximum(ev, od)

    def conv_bn_relu(pad_ref, w_ref, o_ref, act_ref, L):
        # Conv1d(k=5, pad=2) + folded-BN offset + ReLU, as 5 accumulated
        # matmuls against per-tap weight slices (no im2col temp / concat).
        rows = NB * L
        pos = jax.lax.broadcasted_iota(jnp.int32, (rows, 1), 0) % L
        y = None
        for k in range(KSIZE):
            d = k - PAD
            tap = pad_ref[pl.ds(HALO + d, rows), :]          # (rows, Cin)
            if d < 0:                                        # one bound per tap
                tap = jnp.where(pos >= -d, tap, 0.0)
            elif d > 0:
                tap = jnp.where(pos < L - d, tap, 0.0)
            contrib = jnp.dot(tap, w_ref[k], preferred_element_type=jnp.float32)
            y = contrib if y is None else y + contrib
        act_ref[...] = jnp.maximum(y + o_ref[...], 0.0)      # offset + ReLU

    # ---- conv block 1: host-side im2col taps -> one small matmul ------------
    y1 = jnp.dot(x1_ref[...], w1_ref[...], preferred_element_type=jnp.float32)
    act1_ref[...] = jnp.maximum(y1 + o1_ref[...], 0.0)

    pool_into(act1_ref, pad2_ref, R1)
    conv_bn_relu(pad2_ref, w2_ref, o2_ref, act2_ref, L0 // 2)
    pool_into(act2_ref, pad3_ref, R1 // 2)
    conv_bn_relu(pad3_ref, w3_ref, o3_ref, act3_ref, L0 // 4)

    # ---- layer-3 maxpool fused with classifier layer 1 ----------------------
    # PyTorch's channel-major z.view(N,-1) ordering is absorbed into the
    # per-position weight blocks w1c (permuted in the wrapper), so the pooled
    # flatten becomes an accumulation of L3 small matmuls (no lane concat).
    L3 = L0 // 8
    acc = None
    for l in range(L3):
        ev = act3_ref[pl.ds(2 * l, NB, 2 * L3), :]
        od = act3_ref[pl.ds(2 * l + 1, NB, 2 * L3), :]
        xl = jnp.maximum(ev, od)                             # (NB, 36)
        c = jnp.dot(xl, w1c_ref[l], preferred_element_type=jnp.float32)
        acc = c if acc is None else acc + c
    h = jnp.maximum(acc + bc1_ref[...], 0.0)
    h = jnp.maximum(jnp.dot(h, wc2_ref[...],
                            preferred_element_type=jnp.float32) + bc2_ref[...], 0.0)
    logits = jnp.dot(h, wc3_ref[...],
                     preferred_element_type=jnp.float32) + bc3_ref[...]

    # Softmax with an EXACT normalization (rows must sum to 1).
    m = jnp.max(logits, axis=-1, keepdims=True)
    e = jnp.exp(logits - m)
    prob_ref[...] = e / jnp.sum(e, axis=-1, keepdims=True)


# ---------------------------------------------------------------------------
# Wrapper: parameter folding + layout plumbing, batch-gridded pallas_call
# ---------------------------------------------------------------------------
def _fold_conv_bn(conv_params):
    """Fold eval-BN scale into the conv weight; return (K,Cin,Cout) weight and
    a (1,Cout) offset covering conv bias + BN shift."""
    w, b, g, beta, mu, var = conv_params                  # w: (K, Cout, Cin)
    scale = g.reshape(-1) * jax.lax.rsqrt(var.reshape(-1) + BN_EPS)   # (Cout,)
    offset = ((b.reshape(-1) - mu.reshape(-1)) * scale + beta.reshape(-1))
    w_scaled = jnp.transpose(w, (0, 2, 1)) * scale[None, None, :]     # (K,Cin,Cout)
    return w_scaled, offset.reshape(1, -1)


def _permute_w1(w1, l3):
    """Reorder W1 rows from PyTorch channel-major flatten (c*L3+l) to per-
    position blocks (L3, C3, H1) used by the fused pool3+matmul accumulation."""
    feat, h1 = w1.shape
    c3 = feat // l3
    return w1.reshape(c3, l3, h1).transpose(1, 0, 2)      # (L3, C3, H1)


def _im2col_conv1(x):
    """Host-side im2col for the Cin=1 first conv: (N,1,L0) -> (N*L0, K1) with
    per-sample zero padding baked in (layout plumbing only)."""
    n, _, l0 = x.shape
    xp = jnp.pad(x[:, 0, :], ((0, 0), (PAD, PAD)))
    taps = jnp.stack([xp[:, k:k + l0] for k in range(KSIZE)], axis=-1)
    taps = taps.reshape(n * l0, KSIZE)
    return jnp.pad(taps, ((0, 0), (0, K1 - KSIZE)))


def _ceil_to(v, m):
    return (v + m - 1) // m * m


def _padded_f32_bytes(shape):
    shape = tuple(int(s) for s in shape)
    if len(shape) == 1:
        shape = (1,) + shape
    lead = 1
    for s in shape[:-2]:
        lead *= s
    return lead * _ceil_to(shape[-2], 8) * _ceil_to(shape[-1], 128) * 4


def model3_forward(params, x, y=None, infer=False, batch_block=8):
    """Model3.forward with uses_attention=False.  y / infer are unused."""
    del y, infer
    N, c_in, L0 = x.shape
    assert c_in == 1, "kernel assumes Cin=1 (matches the PyTorch model)"
    assert L0 % 8 == 0, "kernel assumes spectral size divisible by 8"
    NB = min(batch_block, N)
    assert N % NB == 0, "batch must be divisible by the batch block"
    L3 = L0 // 8

    # ---- fold parameters (all wrapper-side constant work) -------------------
    w1s, o1 = _fold_conv_bn(params["conv1"])
    w1f = jnp.pad(w1s[:, 0, :], ((0, K1 - KSIZE), (0, 0)))     # (K1, 96)
    w2s, o2 = _fold_conv_bn(params["conv2"])                   # (5, 96, 54)
    w3s, o3 = _fold_conv_bn(params["conv3"])                   # (5, 54, 36)
    wc1, bc1, wc2, bc2, wc3, bc3 = params["cls"]
    w1c = _permute_w1(wc1, L3)                                 # (L3, 36, 512)
    NC = wc3.shape[1]
    C1, C2, C3 = w1f.shape[1], w2s.shape[2], w3s.shape[2]

    x1 = _im2col_conv1(x)                                      # (N*L0, K1)

    R1 = NB * L0
    grid = (N // NB,)

    rows_map = lambda i: (i, 0)
    const2 = lambda i: (0, 0)
    const3 = lambda i: (0, 0, 0)

    in_specs = [
        pl.BlockSpec((R1, K1), rows_map),          # conv1 im2col taps (per block)
        pl.BlockSpec(w1f.shape, const2),
        pl.BlockSpec(o1.shape, const2),
        pl.BlockSpec(w2s.shape, const3),
        pl.BlockSpec(o2.shape, const2),
        pl.BlockSpec(w3s.shape, const3),
        pl.BlockSpec(o3.shape, const2),
        pl.BlockSpec(w1c.shape, const3),
        pl.BlockSpec(bc1.shape, const2),
        pl.BlockSpec(wc2.shape, const2),
        pl.BlockSpec(bc2.shape, const2),
        pl.BlockSpec(wc3.shape, const2),
        pl.BlockSpec(bc3.shape, const2),
    ]
    out_spec = pl.BlockSpec((NB, NC), rows_map)

    scratch_py = [
        (R1, C1),                       # act1 (conv1 output, pre-pool)
        (R1 // 2 + 2 * HALO, C1),       # pad2 (pooled act1, aligned interior)
        (R1 // 2, C2),                  # act2
        (R1 // 4 + 2 * HALO, C2),       # pad3
        (R1 // 4, C3),                  # act3
    ]
    scratch_shapes = [pltpu.VMEM(s, jnp.float32) for s in scratch_py]

    # vmem limit from 128-lane-padded block sizes (double-buffered ins/outs).
    block_shapes = [(R1, K1), w1f.shape, o1.shape, w2s.shape, o2.shape,
                    w3s.shape, o3.shape, w1c.shape, bc1.shape, wc2.shape,
                    bc2.shape, wc3.shape, bc3.shape]
    est = (2 * sum(_padded_f32_bytes(s) for s in block_shapes)
           + 2 * _padded_f32_bytes((NB, NC))
           + sum(_padded_f32_bytes(s) for s in scratch_py))
    vmem_limit = min(max(2 * est + (8 << 20), 32 << 20), 56 << 20)

    kernel = functools.partial(_fused_model3_kernel, NB=NB, L0=L0)
    return pl.pallas_call(
        kernel,
        out_shape=jax.ShapeDtypeStruct((N, NC), jnp.float32),
        grid=grid,
        in_specs=in_specs,
        out_specs=out_spec,
        scratch_shapes=scratch_shapes,
        compiler_params=pltpu.CompilerParams(
            dimension_semantics=("parallel",),
            vmem_limit_bytes=int(vmem_limit)),
    )(x1, w1f, o1, w2s, o2, w3s, o3, w1c, bc1, wc2, bc2, wc3, bc3)


# ---------------------------------------------------------------------------
# Parameter init (deterministic, synthetic)
# ---------------------------------------------------------------------------
def _init_conv(key, c_in, c_out):
    k = jax.random.split(key, 6)
    w = 0.1 * jax.random.normal(k[0], (KSIZE, c_out, c_in), jnp.float32)
    b = 0.05 * jax.random.normal(k[1], (c_out, 1), jnp.float32)
    g = 1.0 + 0.1 * jax.random.normal(k[2], (c_out, 1), jnp.float32)
    beta = 0.05 * jax.random.normal(k[3], (c_out, 1), jnp.float32)
    mu = 0.05 * jax.random.normal(k[4], (c_out, 1), jnp.float32)
    var = jnp.abs(0.1 * jax.random.normal(k[5], (c_out, 1), jnp.float32)) + 1.0
    return (w, b, g, beta, mu, var)


def _init_linear(key, d_in, d_out):
    k1, k2 = jax.random.split(key)
    w = jax.random.normal(k1, (d_in, d_out), jnp.float32) / np.sqrt(d_in)
    b = 0.05 * jax.random.normal(k2, (1, d_out), jnp.float32)
    return w, b


def init_params(key, num_classes, input_dimension):
    assert int(input_dimension / 8) > 0
    feat = 36 * int(input_dimension / 8)
    k = jax.random.split(key, 6)
    w1, b1 = _init_linear(k[3], feat, 512)
    w2, b2 = _init_linear(k[4], 512, 128)
    w3, b3 = _init_linear(k[5], 128, num_classes)
    return {
        "conv1": _init_conv(k[0], 1, 96),
        "conv2": _init_conv(k[1], 96, 54),
        "conv3": _init_conv(k[2], 54, 36),
        "cls": (w1, b1, w2, b2, w3, b3),
    }


# ---------------------------------------------------------------------------
# Pure-JAX reference (faithful PyTorch semantics, for correctness check only)
# ---------------------------------------------------------------------------
def reference_forward(params, x):
    def conv_ref(xx, p):
        w, b, g, beta, mu, var = p
        _, _, L = xx.shape
        xpad = jnp.pad(xx, ((0, 0), (0, 0), (PAD, PAD)))
        out = jnp.zeros((xx.shape[0], w.shape[1], L), jnp.float32)
        for k in range(KSIZE):
            out = out + jnp.einsum("oc,ncl->nol", w[k], xpad[:, :, k:k + L],
                                   precision=jax.lax.Precision.HIGHEST)
        out = out + b[None]
        out = (out - mu[None]) * (g[None] * jax.lax.rsqrt(var[None] + BN_EPS)) \
            + beta[None]
        out = jnp.maximum(out, 0.0)
        return jnp.maximum(out[:, :, 0::2], out[:, :, 1::2])

    z = conv_ref(x, params["conv1"])
    z = conv_ref(z, params["conv2"])
    z = conv_ref(z, params["conv3"])
    zf = z.reshape(z.shape[0], -1)                 # channel-major flatten
    w1, b1, w2, b2, w3, b3 = params["cls"]
    hp = jax.lax.Precision.HIGHEST
    h = jnp.maximum(jnp.dot(zf, w1, precision=hp) + b1, 0.0)
    h = jnp.maximum(jnp.dot(h, w2, precision=hp) + b2, 0.0)
    logits = jnp.dot(h, w3, precision=hp) + b3
    return jax.nn.softmax(logits, axis=1)


if __name__ == "__main__":
    num_classes = 9
    input_dimension = 16
    batch = 16          # grid of 2 batch blocks (NB=8) -> both v7x cores used

    key = jax.random.PRNGKey(0)
    kp, kx, ky = jax.random.split(key, 3)
    params = init_params(kp, num_classes, input_dimension)

    x = jax.random.normal(kx, (batch, 1, input_dimension), jnp.float32)
    y = jax.nn.one_hot(
        jax.random.randint(ky, (batch,), 0, num_classes), num_classes)  # unused

    fwd = jax.jit(functools.partial(model3_forward, batch_block=8))
    out = jax.block_until_ready(fwd(params, x))

    ref = reference_forward(params, x)
    assert out.shape == (batch, num_classes)
    np.testing.assert_allclose(np.asarray(out), np.asarray(ref),
                               atol=2e-3, rtol=2e-3)
    assert np.allclose(np.asarray(out).sum(axis=1), 1.0, atol=1e-4)
    print("KERNEL_OK")
</pallas_src>

<mosaic_0001>
module attributes {stable_mosaic.version = 11 : i64} {
  func.func @_fused_model3_kernel(%arg0: i32, %arg1: memref<128x8xf32, #tpu.memory_space<vmem>>, %arg2: memref<8x96xf32, #tpu.memory_space<vmem>>, %arg3: memref<1x96xf32, #tpu.memory_space<vmem>>, %arg4: memref<5x96x54xf32, #tpu.memory_space<vmem>>, %arg5: memref<1x54xf32, #tpu.memory_space<vmem>>, %arg6: memref<5x54x36xf32, #tpu.memory_space<vmem>>, %arg7: memref<1x36xf32, #tpu.memory_space<vmem>>, %arg8: memref<2x36x512xf32, #tpu.memory_space<vmem>>, %arg9: memref<1x512xf32, #tpu.memory_space<vmem>>, %arg10: memref<512x128xf32, #tpu.memory_space<vmem>>, %arg11: memref<1x128xf32, #tpu.memory_space<vmem>>, %arg12: memref<128x9xf32, #tpu.memory_space<vmem>>, %arg13: memref<1x9xf32, #tpu.memory_space<vmem>>, %arg14: memref<8x9xf32, #tpu.memory_space<vmem>>, %arg15: memref<128x96xf32, #tpu.memory_space<vmem>>, %arg16: memref<80x96xf32, #tpu.memory_space<vmem>>, %arg17: memref<64x54xf32, #tpu.memory_space<vmem>>, %arg18: memref<48x54xf32, #tpu.memory_space<vmem>>, %arg19: memref<32x36xf32, #tpu.memory_space<vmem>>) attributes {dimension_semantics = [#tpu.dimension_semantics<parallel>], iteration_bounds = array<i64: 2>, scalar_prefetch = 0 : i64, scratch_operands = 5 : i64, tpu.core_type = #tpu.core_type<tc>, window_params = [{transform_indices = @transform_0, window_bounds = array<i64: 128, 8>}, {pipeline_mode = #tpu.pipeline_mode<synchronous>, transform_indices = @transform_1, window_bounds = array<i64: 8, 96>}, {pipeline_mode = #tpu.pipeline_mode<synchronous>, transform_indices = @transform_2, window_bounds = array<i64: 1, 96>}, {pipeline_mode = #tpu.pipeline_mode<synchronous>, transform_indices = @transform_3, window_bounds = array<i64: 5, 96, 54>}, {pipeline_mode = #tpu.pipeline_mode<synchronous>, transform_indices = @transform_4, window_bounds = array<i64: 1, 54>}, {pipeline_mode = #tpu.pipeline_mode<synchronous>, transform_indices = @transform_5, window_bounds = array<i64: 5, 54, 36>}, {pipeline_mode = #tpu.pipeline_mode<synchronous>, transform_indices = @transform_6, window_bounds = array<i64: 1, 36>}, {pipeline_mode = #tpu.pipeline_mode<synchronous>, transform_indices = @transform_7, window_bounds = array<i64: 2, 36, 512>}, {pipeline_mode = #tpu.pipeline_mode<synchronous>, transform_indices = @transform_8, window_bounds = array<i64: 1, 512>}, {pipeline_mode = #tpu.pipeline_mode<synchronous>, transform_indices = @transform_9, window_bounds = array<i64: 512, 128>}, {pipeline_mode = #tpu.pipeline_mode<synchronous>, transform_indices = @transform_10, window_bounds = array<i64: 1, 128>}, {pipeline_mode = #tpu.pipeline_mode<synchronous>, transform_indices = @transform_11, window_bounds = array<i64: 128, 9>}, {pipeline_mode = #tpu.pipeline_mode<synchronous>, transform_indices = @transform_12, window_bounds = array<i64: 1, 9>}, {transform_indices = @transform_13, window_bounds = array<i64: 8, 9>}]} {
    %c0 = arith.constant 0 : index
    %c0_0 = arith.constant 0 : index
    %0 = vector.load %arg1[%c0, %c0_0] : memref<128x8xf32, #tpu.memory_space<vmem>>, vector<128x8xf32>
    %c0_1 = arith.constant 0 : index
    %c0_2 = arith.constant 0 : index
    %1 = vector.load %arg2[%c0_1, %c0_2] : memref<8x96xf32, #tpu.memory_space<vmem>>, vector<8x96xf32>
    %cst = arith.constant dense<0.000000e+00> : vector<128x96xf32>
    %2 = tpu.matmul %0, %1, %cst {dimension_numbers = #tpu.dot_dimension_numbers<[1], [0], [0], [1], [0, 0, 1, 1], [], []>} : vector<128x8xf32>, vector<8x96xf32>, vector<128x96xf32> -> vector<128x96xf32>
    %c0_3 = arith.constant 0 : index
    %c0_4 = arith.constant 0 : index
    %3 = vector.load %arg3[%c0_3, %c0_4] : memref<1x96xf32, #tpu.memory_space<vmem>>, vector<1x96xf32>
    %4 = vector.broadcast %3 : vector<1x96xf32> to vector<128x96xf32>
    %5 = arith.addf %2, %4 : vector<128x96xf32>
    %cst_5 = arith.constant 0.000000e+00 : f32
    %6 = vector.broadcast %cst_5 : f32 to vector<128x96xf32>
    %7 = arith.maximumf %5, %6 : vector<128x96xf32>
    %c0_6 = arith.constant 0 : index
    %c0_7 = arith.constant 0 : index
    %8 = vector.load %arg15[%c0_6, %c0_7] : memref<128x96xf32, #tpu.memory_space<vmem>>, vector<128x96xf32>
    tpu.vector_store %arg15[%c0_6, %c0_7], %7 {strides = array<i32>} : memref<128x96xf32, #tpu.memory_space<vmem>>, vector<128x96xf32>,
    %c0_8 = arith.constant 0 : index
    %c0_9 = arith.constant 0 : index
    %9 = tpu.strided_load %arg15[%c0_8, %c0_9] {strides = array<i32: 2, 1>} : memref<128x96xf32, #tpu.memory_space<vmem>>, vector<64x96xf32>
    %c1 = arith.constant 1 : index
    %c0_10 = arith.constant 0 : index
    %10 = tpu.strided_load %arg15[%c1, %c0_10] {strides = array<i32: 2, 1>} : memref<128x96xf32, #tpu.memory_space<vmem>>, vector<64x96xf32>
    %11 = arith.maximumf %9, %10 : vector<64x96xf32>
    %c8 = arith.constant 8 : index
    %c0_11 = arith.constant 0 : index
    %12 = vector.load %arg16[%c8, %c0_11] : memref<80x96xf32, #tpu.memory_space<vmem>>, vector<64x96xf32>
    tpu.vector_store %arg16[%c8, %c0_11], %11 {strides = array<i32>} : memref<80x96xf32, #tpu.memory_space<vmem>>, vector<64x96xf32>,
    %13 = tpu.iota {dimensions = array<i32: 0>} : vector<64x1xi32>
    %c8_i32 = arith.constant 8 : i32
    %c0_i32 = arith.constant 0 : i32
    %14 = arith.cmpi eq, %c8_i32, %c0_i32 : i32
    %c1_i32 = arith.constant 1 : i32
    %15 = arith.select %14, %c1_i32, %c8_i32 : i32
    %16 = vector.broadcast %15 : i32 to vector<64x1xi32>
    %17 = arith.remsi %13, %16 : vector<64x1xi32>
    %c0_i32_12 = arith.constant 0 : i32
    %18 = vector.broadcast %c0_i32_12 : i32 to vector<64x1xi32>
    %19 = arith.cmpi ne, %17, %18 : vector<64x1xi32>
    %c0_i32_13 = arith.constant 0 : i32
    %20 = vector.broadcast %c0_i32_13 : i32 to vector<64x1xi32>
    %21 = arith.cmpi slt, %17, %20 : vector<64x1xi32>
    %c0_i32_14 = arith.constant 0 : i32
    %22 = arith.cmpi slt, %15, %c0_i32_14 : i32
    %23 = vector.broadcast %22 : i1 to vector<64x1xi1>
    %24 = vector.broadcast %23 : vector<64x1xi1> to vector<64x1xi1>
    %25 = arith.xori %21, %24 : vector<64x1xi1>
    %26 = arith.andi %25, %19 : vector<64x1xi1>
    %27 = vector.broadcast %15 : i32 to vector<64x1xi32>
    %28 = arith.addi %17, %27 : vector<64x1xi32>
    %29 = arith.select %26, %28, %17 : vector<64x1xi1>, vector<64x1xi32>
    %c6 = arith.constant 6 : index
    %c0_15 = arith.constant 0 : index
    %30 = vector.load %arg16[%c6, %c0_15] : memref<80x96xf32, #tpu.memory_space<vmem>>, vector<64x96xf32>
    %c2_i32 = arith.constant 2 : i32
    %31 = vector.broadcast %c2_i32 : i32 to vector<64x1xi32>
    %32 = arith.cmpi sge, %29, %31 : vector<64x1xi32>
    %cst_16 = arith.constant 0.000000e+00 : f32
    %33 = vector.shape_cast %32 : vector<64x1xi1> to vector<64x1xi1>
    %34 = vector.broadcast %33 : vector<64x1xi1> to vector<64x96xi1>
    %35 = vector.broadcast %cst_16 : f32 to vector<64x96xf32>
    %36 = arith.select %34, %30, %35 : vector<64x96xi1>, vector<64x96xf32>
    %c0_17 = arith.constant 0 : index
    %c0_18 = arith.constant 0 : index
    %c0_19 = arith.constant 0 : index
    %37 = vector.load %arg4[%c0_17, %c0_18, %c0_19] : memref<5x96x54xf32, #tpu.memory_space<vmem>>, vector<1x96x54xf32>
    %38 = vector.shape_cast %37 : vector<1x96x54xf32> to vector<96x54xf32>
    %cst_20 = arith.constant dense<0.000000e+00> : vector<64x54xf32>
    %39 = tpu.matmul %36, %38, %cst_20 {dimension_numbers = #tpu.dot_dimension_numbers<[1], [0], [0], [1], [0, 0, 1, 1], [], []>} : vector<64x96xf32>, vector<96x54xf32>, vector<64x54xf32> -> vector<64x54xf32>
    %c7 = arith.constant 7 : index
    %c0_21 = arith.constant 0 : index
    %40 = vector.load %arg16[%c7, %c0_21] : memref<80x96xf32, #tpu.memory_space<vmem>>, vector<64x96xf32>
    %c1_i32_22 = arith.constant 1 : i32
    %41 = vector.broadcast %c1_i32_22 : i32 to vector<64x1xi32>
    %42 = arith.cmpi sge, %29, %41 : vector<64x1xi32>
    %cst_23 = arith.constant 0.000000e+00 : f32
    %43 = vector.shape_cast %42 : vector<64x1xi1> to vector<64x1xi1>
    %44 = vector.broadcast %43 : vector<64x1xi1> to vector<64x96xi1>
    %45 = vector.broadcast %cst_23 : f32 to vector<64x96xf32>
    %46 = arith.select %44, %40, %45 : vector<64x96xi1>, vector<64x96xf32>
    %c1_24 = arith.constant 1 : index
    %c0_25 = arith.constant 0 : index
    %c0_26 = arith.constant 0 : index
    %47 = vector.load %arg4[%c1_24, %c0_25, %c0_26] : memref<5x96x54xf32, #tpu.memory_space<vmem>>, vector<1x96x54xf32>
    %48 = vector.shape_cast %47 : vector<1x96x54xf32> to vector<96x54xf32>
    %cst_27 = arith.constant dense<0.000000e+00> : vector<64x54xf32>
    %49 = tpu.matmul %46, %48, %cst_27 {dimension_numbers = #tpu.dot_dimension_numbers<[1], [0], [0], [1], [0, 0, 1, 1], [], []>} : vector<64x96xf32>, vector<96x54xf32>, vector<64x54xf32> -> vector<64x54xf32>
    %50 = arith.addf %39, %49 : vector<64x54xf32>
    %c8_28 = arith.constant 8 : index
    %c0_29 = arith.constant 0 : index
    %51 = vector.load %arg16[%c8_28, %c0_29] : memref<80x96xf32, #tpu.memory_space<vmem>>, vector<64x96xf32>
    %c2 = arith.constant 2 : index
    %c0_30 = arith.constant 0 : index
    %c0_31 = arith.constant 0 : index
    %52 = vector.load %arg4[%c2, %c0_30, %c0_31] : memref<5x96x54xf32, #tpu.memory_space<vmem>>, vector<1x96x54xf32>
    %53 = vector.shape_cast %52 : vector<1x96x54xf32> to vector<96x54xf32>
    %cst_32 = arith.constant dense<0.000000e+00> : vector<64x54xf32>
    %54 = tpu.matmul %51, %53, %cst_32 {dimension_numbers = #tpu.dot_dimension_numbers<[1], [0], [0], [1], [0, 0, 1, 1], [], []>} : vector<64x96xf32>, vector<96x54xf32>, vector<64x54xf32> -> vector<64x54xf32>
    %55 = arith.addf %50, %54 : vector<64x54xf32>
    %c9 = arith.constant 9 : index
    %c0_33 = arith.constant 0 : index
    %56 = vector.load %arg16[%c9, %c0_33] : memref<80x96xf32, #tpu.memory_space<vmem>>, vector<64x96xf32>
    %c7_i32 = arith.constant 7 : i32
    %57 = vector.broadcast %c7_i32 : i32 to vector<64x1xi32>
    %58 = arith.cmpi slt, %29, %57 : vector<64x1xi32>
    %cst_34 = arith.constant 0.000000e+00 : f32
    %59 = vector.shape_cast %58 : vector<64x1xi1> to vector<64x1xi1>
    %60 = vector.broadcast %59 : vector<64x1xi1> to vector<64x96xi1>
    %61 = vector.broadcast %cst_34 : f32 to vector<64x96xf32>
    %62 = arith.select %60, %56, %61 : vector<64x96xi1>, vector<64x96xf32>
    %c3 = arith.constant 3 : index
    %c0_35 = arith.constant 0 : index
    %c0_36 = arith.constant 0 : index
    %63 = vector.load %arg4[%c3, %c0_35, %c0_36] : memref<5x96x54xf32, #tpu.memory_space<vmem>>, vector<1x96x54xf32>
    %64 = vector.shape_cast %63 : vector<1x96x54xf32> to vector<96x54xf32>
    %cst_37 = arith.constant dense<0.000000e+00> : vector<64x54xf32>
    %65 = tpu.matmul %62, %64, %cst_37 {dimension_numbers = #tpu.dot_dimension_numbers<[1], [0], [0], [1], [0, 0, 1, 1], [], []>} : vector<64x96xf32>, vector<96x54xf32>, vector<64x54xf32> -> vector<64x54xf32>
    %66 = arith.addf %55, %65 : vector<64x54xf32>
    %c10 = arith.constant 10 : index
    %c0_38 = arith.constant 0 : index
    %67 = vector.load %arg16[%c10, %c0_38] : memref<80x96xf32, #tpu.memory_space<vmem>>, vector<64x96xf32>
    %c6_i32 = arith.constant 6 : i32
    %68 = vector.broadcast %c6_i32 : i32 to vector<64x1xi32>
    %69 = arith.cmpi slt, %29, %68 : vector<64x1xi32>
    %cst_39 = arith.constant 0.000000e+00 : f32
    %70 = vector.shape_cast %69 : vector<64x1xi1> to vector<64x1xi1>
    %71 = vector.broadcast %70 : vector<64x1xi1> to vector<64x96xi1>
    %72 = vector.broadcast %cst_39 : f32 to vector<64x96xf32>
    %73 = arith.select %71, %67, %72 : vector<64x96xi1>, vector<64x96xf32>
    %c4 = arith.constant 4 : index
    %c0_40 = arith.constant 0 : index
    %c0_41 = arith.constant 0 : index
    %74 = vector.load %arg4[%c4, %c0_40, %c0_41] : memref<5x96x54xf32, #tpu.memory_space<vmem>>, vector<1x96x54xf32>
    %75 = vector.shape_cast %74 : vector<1x96x54xf32> to vector<96x54xf32>
    %cst_42 = arith.constant dense<0.000000e+00> : vector<64x54xf32>
    %76 = tpu.matmul %73, %75, %cst_42 {dimension_numbers = #tpu.dot_dimension_numbers<[1], [0], [0], [1], [0, 0, 1, 1], [], []>} : vector<64x96xf32>, vector<96x54xf32>, vector<64x54xf32> -> vector<64x54xf32>
    %77 = arith.addf %66, %76 : vector<64x54xf32>
    %c0_43 = arith.constant 0 : index
    %c0_44 = arith.constant 0 : index
    %78 = vector.load %arg5[%c0_43, %c0_44] : memref<1x54xf32, #tpu.memory_space<vmem>>, vector<1x54xf32>
    %79 = vector.broadcast %78 : vector<1x54xf32> to vector<64x54xf32>
    %80 = arith.addf %77, %79 : vector<64x54xf32>
    %cst_45 = arith.constant 0.000000e+00 : f32
    %81 = vector.broadcast %cst_45 : f32 to vector<64x54xf32>
    %82 = arith.maximumf %80, %81 : vector<64x54xf32>
    %c0_46 = arith.constant 0 : index
    %c0_47 = arith.constant 0 : index
    %83 = vector.load %arg17[%c0_46, %c0_47] : memref<64x54xf32, #tpu.memory_space<vmem>>, vector<64x54xf32>
    tpu.vector_store %arg17[%c0_46, %c0_47], %82 {strides = array<i32>} : memref<64x54xf32, #tpu.memory_space<vmem>>, vector<64x54xf32>,
    %c0_48 = arith.constant 0 : index
    %c0_49 = arith.constant 0 : index
    %84 = tpu.strided_load %arg17[%c0_48, %c0_49] {strides = array<i32: 2, 1>} : memref<64x54xf32, #tpu.memory_space<vmem>>, vector<32x54xf32>
    %c1_50 = arith.constant 1 : index
    %c0_51 = arith.constant 0 : index
    %85 = tpu.strided_load %arg17[%c1_50, %c0_51] {strides = array<i32: 2, 1>} : memref<64x54xf32, #tpu.memory_space<vmem>>, vector<32x54xf32>
    %86 = arith.maximumf %84, %85 : vector<32x54xf32>
    %c8_52 = arith.constant 8 : index
    %c0_53 = arith.constant 0 : index
    %87 = vector.load %arg18[%c8_52, %c0_53] : memref<48x54xf32, #tpu.memory_space<vmem>>, vector<32x54xf32>
    tpu.vector_store %arg18[%c8_52, %c0_53], %86 {strides = array<i32>} : memref<48x54xf32, #tpu.memory_space<vmem>>, vector<32x54xf32>,
    %88 = tpu.iota {dimensions = array<i32: 0>} : vector<32x1xi32>
    %c4_i32 = arith.constant 4 : i32
    %c0_i32_54 = arith.constant 0 : i32
    %89 = arith.cmpi eq, %c4_i32, %c0_i32_54 : i32
    %c1_i32_55 = arith.constant 1 : i32
    %90 = arith.select %89, %c1_i32_55, %c4_i32 : i32
    %91 = vector.broadcast %90 : i32 to vector<32x1xi32>
    %92 = arith.remsi %88, %91 : vector<32x1xi32>
    %c0_i32_56 = arith.constant 0 : i32
    %93 = vector.broadcast %c0_i32_56 : i32 to vector<32x1xi32>
    %94 = arith.cmpi ne, %92, %93 : vector<32x1xi32>
    %c0_i32_57 = arith.constant 0 : i32
    %95 = vector.broadcast %c0_i32_57 : i32 to vector<32x1xi32>
    %96 = arith.cmpi slt, %92, %95 : vector<32x1xi32>
    %c0_i32_58 = arith.constant 0 : i32
    %97 = arith.cmpi slt, %90, %c0_i32_58 : i32
    %98 = vector.broadcast %97 : i1 to vector<32x1xi1>
    %99 = vector.broadcast %98 : vector<32x1xi1> to vector<32x1xi1>
    %100 = arith.xori %96, %99 : vector<32x1xi1>
    %101 = arith.andi %100, %94 : vector<32x1xi1>
    %102 = vector.broadcast %90 : i32 to vector<32x1xi32>
    %103 = arith.addi %92, %102 : vector<32x1xi32>
    %104 = arith.select %101, %103, %92 : vector<32x1xi1>, vector<32x1xi32>
    %c6_59 = arith.constant 6 : index
    %c0_60 = arith.constant 0 : index
    %105 = vector.load %arg18[%c6_59, %c0_60] : memref<48x54xf32, #tpu.memory_space<vmem>>, vector<32x54xf32>
    %c2_i32_61 = arith.constant 2 : i32
    %106 = vector.broadcast %c2_i32_61 : i32 to vector<32x1xi32>
    %107 = arith.cmpi sge, %104, %106 : vector<32x1xi32>
    %cst_62 = arith.constant 0.000000e+00 : f32
    %108 = vector.shape_cast %107 : vector<32x1xi1> to vector<32x1xi1>
    %109 = vector.broadcast %108 : vector<32x1xi1> to vector<32x54xi1>
    %110 = vector.broadcast %cst_62 : f32 to vector<32x54xf32>
    %111 = arith.select %109, %105, %110 : vector<32x54xi1>, vector<32x54xf32>
    %c0_63 = arith.constant 0 : index
    %c0_64 = arith.constant 0 : index
    %c0_65 = arith.constant 0 : index
    %112 = vector.load %arg6[%c0_63, %c0_64, %c0_65] : memref<5x54x36xf32, #tpu.memory_space<vmem>>, vector<1x54x36xf32>
    %113 = vector.shape_cast %112 : vector<1x54x36xf32> to vector<54x36xf32>
    %cst_66 = arith.constant dense<0.000000e+00> : vector<32x36xf32>
    %114 = tpu.matmul %111, %113, %cst_66 {dimension_numbers = #tpu.dot_dimension_numbers<[1], [0], [0], [1], [0, 0, 1, 1], [], []>} : vector<32x54xf32>, vector<54x36xf32>, vector<32x36xf32> -> vector<32x36xf32>
    %c7_67 = arith.constant 7 : index
    %c0_68 = arith.constant 0 : index
    %115 = vector.load %arg18[%c7_67, %c0_68] : memref<48x54xf32, #tpu.memory_space<vmem>>, vector<32x54xf32>
    %c1_i32_69 = arith.constant 1 : i32
    %116 = vector.broadcast %c1_i32_69 : i32 to vector<32x1xi32>
    %117 = arith.cmpi sge, %104, %116 : vector<32x1xi32>
    %cst_70 = arith.constant 0.000000e+00 : f32
    %118 = vector.shape_cast %117 : vector<32x1xi1> to vector<32x1xi1>
    %119 = vector.broadcast %118 : vector<32x1xi1> to vector<32x54xi1>
    %120 = vector.broadcast %cst_70 : f32 to vector<32x54xf32>
    %121 = arith.select %119, %115, %120 : vector<32x54xi1>, vector<32x54xf32>
    %c1_71 = arith.constant 1 : index
    %c0_72 = arith.constant 0 : index
    %c0_73 = arith.constant 0 : index
    %122 = vector.load %arg6[%c1_71, %c0_72, %c0_73] : memref<5x54x36xf32, #tpu.memory_space<vmem>>, vector<1x54x36xf32>
    %123 = vector.shape_cast %122 : vector<1x54x36xf32> to vector<54x36xf32>
    %cst_74 = arith.constant dense<0.000000e+00> : vector<32x36xf32>
    %124 = tpu.matmul %121, %123, %cst_74 {dimension_numbers = #tpu.dot_dimension_numbers<[1], [0], [0], [1], [0, 0, 1, 1], [], []>} : vector<32x54xf32>, vector<54x36xf32>, vector<32x36xf32> -> vector<32x36xf32>
    %125 = arith.addf %114, %124 : vector<32x36xf32>
    %c8_75 = arith.constant 8 : index
    %c0_76 = arith.constant 0 : index
    %126 = vector.load %arg18[%c8_75, %c0_76] : memref<48x54xf32, #tpu.memory_space<vmem>>, vector<32x54xf32>
    %c2_77 = arith.constant 2 : index
    %c0_78 = arith.constant 0 : index
    %c0_79 = arith.constant 0 : index
    %127 = vector.load %arg6[%c2_77, %c0_78, %c0_79] : memref<5x54x36xf32, #tpu.memory_space<vmem>>, vector<1x54x36xf32>
    %128 = vector.shape_cast %127 : vector<1x54x36xf32> to vector<54x36xf32>
    %cst_80 = arith.constant dense<0.000000e+00> : vector<32x36xf32>
    %129 = tpu.matmul %126, %128, %cst_80 {dimension_numbers = #tpu.dot_dimension_numbers<[1], [0], [0], [1], [0, 0, 1, 1], [], []>} : vector<32x54xf32>, vector<54x36xf32>, vector<32x36xf32> -> vector<32x36xf32>
    %130 = arith.addf %125, %129 : vector<32x36xf32>
    %c9_81 = arith.constant 9 : index
    %c0_82 = arith.constant 0 : index
    %131 = vector.load %arg18[%c9_81, %c0_82] : memref<48x54xf32, #tpu.memory_space<vmem>>, vector<32x54xf32>
    %c3_i32 = arith.constant 3 : i32
    %132 = vector.broadcast %c3_i32 : i32 to vector<32x1xi32>
    %133 = arith.cmpi slt, %104, %132 : vector<32x1xi32>
    %cst_83 = arith.constant 0.000000e+00 : f32
    %134 = vector.shape_cast %133 : vector<32x1xi1> to vector<32x1xi1>
    %135 = vector.broadcast %134 : vector<32x1xi1> to vector<32x54xi1>
    %136 = vector.broadcast %cst_83 : f32 to vector<32x54xf32>
    %137 = arith.select %135, %131, %136 : vector<32x54xi1>, vector<32x54xf32>
    %c3_84 = arith.constant 3 : index
    %c0_85 = arith.constant 0 : index
    %c0_86 = arith.constant 0 : index
    %138 = vector.load %arg6[%c3_84, %c0_85, %c0_86] : memref<5x54x36xf32, #tpu.memory_space<vmem>>, vector<1x54x36xf32>
    %139 = vector.shape_cast %138 : vector<1x54x36xf32> to vector<54x36xf32>
    %cst_87 = arith.constant dense<0.000000e+00> : vector<32x36xf32>
    %140 = tpu.matmul %137, %139, %cst_87 {dimension_numbers = #tpu.dot_dimension_numbers<[1], [0], [0], [1], [0, 0, 1, 1], [], []>} : vector<32x54xf32>, vector<54x36xf32>, vector<32x36xf32> -> vector<32x36xf32>
    %141 = arith.addf %130, %140 : vector<32x36xf32>
    %c10_88 = arith.constant 10 : index
    %c0_89 = arith.constant 0 : index
    %142 = vector.load %arg18[%c10_88, %c0_89] : memref<48x54xf32, #tpu.memory_space<vmem>>, vector<32x54xf32>
    %c2_i32_90 = arith.constant 2 : i32
    %143 = vector.broadcast %c2_i32_90 : i32 to vector<32x1xi32>
    %144 = arith.cmpi slt, %104, %143 : vector<32x1xi32>
    %cst_91 = arith.constant 0.000000e+00 : f32
    %145 = vector.shape_cast %144 : vector<32x1xi1> to vector<32x1xi1>
    %146 = vector.broadcast %145 : vector<32x1xi1> to vector<32x54xi1>
    %147 = vector.broadcast %cst_91 : f32 to vector<32x54xf32>
    %148 = arith.select %146, %142, %147 : vector<32x54xi1>, vector<32x54xf32>
    %c4_92 = arith.constant 4 : index
    %c0_93 = arith.constant 0 : index
    %c0_94 = arith.constant 0 : index
    %149 = vector.load %arg6[%c4_92, %c0_93, %c0_94] : memref<5x54x36xf32, #tpu.memory_space<vmem>>, vector<1x54x36xf32>
    %150 = vector.shape_cast %149 : vector<1x54x36xf32> to vector<54x36xf32>
    %cst_95 = arith.constant dense<0.000000e+00> : vector<32x36xf32>
    %151 = tpu.matmul %148, %150, %cst_95 {dimension_numbers = #tpu.dot_dimension_numbers<[1], [0], [0], [1], [0, 0, 1, 1], [], []>} : vector<32x54xf32>, vector<54x36xf32>, vector<32x36xf32> -> vector<32x36xf32>
    %152 = arith.addf %141, %151 : vector<32x36xf32>
    %c0_96 = arith.constant 0 : index
    %c0_97 = arith.constant 0 : index
    %153 = vector.load %arg7[%c0_96, %c0_97] : memref<1x36xf32, #tpu.memory_space<vmem>>, vector<1x36xf32>
    %154 = vector.broadcast %153 : vector<1x36xf32> to vector<32x36xf32>
    %155 = arith.addf %152, %154 : vector<32x36xf32>
    %cst_98 = arith.constant 0.000000e+00 : f32
    %156 = vector.broadcast %cst_98 : f32 to vector<32x36xf32>
    %157 = arith.maximumf %155, %156 : vector<32x36xf32>
    %c0_99 = arith.constant 0 : index
    %c0_100 = arith.constant 0 : index
    %158 = vector.load %arg19[%c0_99, %c0_100] : memref<32x36xf32, #tpu.memory_space<vmem>>, vector<32x36xf32>
    tpu.vector_store %arg19[%c0_99, %c0_100], %157 {strides = array<i32>} : memref<32x36xf32, #tpu.memory_space<vmem>>, vector<32x36xf32>,
    %c0_101 = arith.constant 0 : index
    %c0_102 = arith.constant 0 : index
    %159 = tpu.strided_load %arg19[%c0_101, %c0_102] {strides = array<i32: 4, 1>} : memref<32x36xf32, #tpu.memory_space<vmem>>, vector<8x36xf32>
    %c1_103 = arith.constant 1 : index
    %c0_104 = arith.constant 0 : index
    %160 = tpu.strided_load %arg19[%c1_103, %c0_104] {strides = array<i32: 4, 1>} : memref<32x36xf32, #tpu.memory_space<vmem>>, vector<8x36xf32>
    %161 = arith.maximumf %159, %160 : vector<8x36xf32>
    %c0_105 = arith.constant 0 : index
    %c0_106 = arith.constant 0 : index
    %c0_107 = arith.constant 0 : index
    %162 = vector.load %arg8[%c0_105, %c0_106, %c0_107] : memref<2x36x512xf32, #tpu.memory_space<vmem>>, vector<1x36x512xf32>
    %163 = vector.shape_cast %162 : vector<1x36x512xf32> to vector<36x512xf32>
    %cst_108 = arith.constant dense<0.000000e+00> : vector<8x512xf32>
    %164 = tpu.matmul %161, %163, %cst_108 {dimension_numbers = #tpu.dot_dimension_numbers<[1], [0], [0], [1], [0, 0, 1, 1], [], []>} : vector<8x36xf32>, vector<36x512xf32>, vector<8x512xf32> -> vector<8x512xf32>
    %c2_109 = arith.constant 2 : index
    %c0_110 = arith.constant 0 : index
    %165 = tpu.strided_load %arg19[%c2_109, %c0_110] {strides = array<i32: 4, 1>} : memref<32x36xf32, #tpu.memory_space<vmem>>, vector<8x36xf32>
    %c3_111 = arith.constant 3 : index
    %c0_112 = arith.constant 0 : index
    %166 = tpu.strided_load %arg19[%c3_111, %c0_112] {strides = array<i32: 4, 1>} : memref<32x36xf32, #tpu.memory_space<vmem>>, vector<8x36xf32>
    %167 = arith.maximumf %165, %166 : vector<8x36xf32>
    %c1_113 = arith.constant 1 : index
    %c0_114 = arith.constant 0 : index
    %c0_115 = arith.constant 0 : index
    %168 = vector.load %arg8[%c1_113, %c0_114, %c0_115] : memref<2x36x512xf32, #tpu.memory_space<vmem>>, vector<1x36x512xf32>
    %169 = vector.shape_cast %168 : vector<1x36x512xf32> to vector<36x512xf32>
    %cst_116 = arith.constant dense<0.000000e+00> : vector<8x512xf32>
    %170 = tpu.matmul %167, %169, %cst_116 {dimension_numbers = #tpu.dot_dimension_numbers<[1], [0], [0], [1], [0, 0, 1, 1], [], []>} : vector<8x36xf32>, vector<36x512xf32>, vector<8x512xf32> -> vector<8x512xf32>
    %171 = arith.addf %164, %170 : vector<8x512xf32>
    %c0_117 = arith.constant 0 : index
    %c0_118 = arith.constant 0 : index
    %172 = vector.load %arg9[%c0_117, %c0_118] : memref<1x512xf32, #tpu.memory_space<vmem>>, vector<1x512xf32>
    %173 = vector.broadcast %172 : vector<1x512xf32> to vector<8x512xf32>
    %174 = arith.addf %171, %173 : vector<8x512xf32>
    %cst_119 = arith.constant 0.000000e+00 : f32
    %175 = vector.broadcast %cst_119 : f32 to vector<8x512xf32>
    %176 = arith.maximumf %174, %175 : vector<8x512xf32>
    %c0_120 = arith.constant 0 : index
    %c0_121 = arith.constant 0 : index
    %177 = vector.load %arg10[%c0_120, %c0_121] : memref<512x128xf32, #tpu.memory_space<vmem>>, vector<512x128xf32>
    %cst_122 = arith.constant dense<0.000000e+00> : vector<8x128xf32>
    %178 = tpu.matmul %176, %177, %cst_122 {dimension_numbers = #tpu.dot_dimension_numbers<[1], [0], [0], [1], [0, 0, 1, 1], [], []>} : vector<8x512xf32>, vector<512x128xf32>, vector<8x128xf32> -> vector<8x128xf32>
    %c0_123 = arith.constant 0 : index
    %c0_124 = arith.constant 0 : index
    %179 = vector.load %arg11[%c0_123, %c0_124] : memref<1x128xf32, #tpu.memory_space<vmem>>, vector<1x128xf32>
    %180 = vector.broadcast %179 : vector<1x128xf32> to vector<8x128xf32>
    %181 = arith.addf %178, %180 : vector<8x128xf32>
    %cst_125 = arith.constant 0.000000e+00 : f32
    %182 = vector.broadcast %cst_125 : f32 to vector<8x128xf32>
    %183 = arith.maximumf %181, %182 : vector<8x128xf32>
    %c0_126 = arith.constant 0 : index
    %c0_127 = arith.constant 0 : index
    %184 = vector.load %arg12[%c0_126, %c0_127] : memref<128x9xf32, #tpu.memory_space<vmem>>, vector<128x9xf32>
    %cst_128 = arith.constant dense<0.000000e+00> : vector<8x9xf32>
    %185 = tpu.matmul %183, %184, %cst_128 {dimension_numbers = #tpu.dot_dimension_numbers<[1], [0], [0], [1], [0, 0, 1, 1], [], []>} : vector<8x128xf32>, vector<128x9xf32>, vector<8x9xf32> -> vector<8x9xf32>
    %c0_129 = arith.constant 0 : index
    %c0_130 = arith.constant 0 : index
    %186 = vector.load %arg13[%c0_129, %c0_130] : memref<1x9xf32, #tpu.memory_space<vmem>>, vector<1x9xf32>
    %187 = vector.broadcast %186 : vector<1x9xf32> to vector<8x9xf32>
    %188 = arith.addf %185, %187 : vector<8x9xf32>
    %cst_131 = arith.constant dense<0xFF800000> : vector<8xf32>
    %189 = vector.multi_reduction <maximumf>, %188, %cst_131 [1] : vector<8x9xf32> to vector<8xf32>
    %190 = vector.shape_cast %189 : vector<8xf32> to vector<8x1xf32>
    %191 = vector.broadcast %190 : vector<8x1xf32> to vector<8x9xf32>
    %192 = arith.subf %188, %191 : vector<8x9xf32>
    %193 = math.exp %192 : vector<8x9xf32>
    %cst_132 = arith.constant dense<0.000000e+00> : vector<8xf32>
    %194 = vector.multi_reduction <add>, %193, %cst_132 [1] : vector<8x9xf32> to vector<8xf32>
    %195 = vector.shape_cast %194 : vector<8xf32> to vector<8x1xf32>
    %196 = vector.broadcast %195 : vector<8x1xf32> to vector<8x9xf32>
    %197 = arith.divf %193, %196 : vector<8x9xf32>
    %c0_133 = arith.constant 0 : index
    %c0_134 = arith.constant 0 : index
    %198 = vector.load %arg14[%c0_133, %c0_134] : memref<8x9xf32, #tpu.memory_space<vmem>>, vector<8x9xf32>
    tpu.vector_store %arg14[%c0_133, %c0_134], %197 {strides = array<i32>} : memref<8x9xf32, #tpu.memory_space<vmem>>, vector<8x9xf32>,
    return
  }
  func.func @transform_0(%arg0: i32) -> (i32, i32) {
    %c0_i32 = arith.constant 0 : i32
    %c0_i32_0 = arith.constant 0 : i32
    return %arg0, %c0_i32 : i32, i32
  }
  func.func @transform_1(%arg0: i32) -> (i32, i32) {
    %c0_i32 = arith.constant 0 : i32
    %c0_i32_0 = arith.constant 0 : i32
    %c0_i32_1 = arith.constant 0 : i32
    return %c0_i32, %c0_i32_0 : i32, i32
  }
  func.func @transform_2(%arg0: i32) -> (i32, i32) {
    %c0_i32 = arith.constant 0 : i32
    %c0_i32_0 = arith.constant 0 : i32
    %c0_i32_1 = arith.constant 0 : i32
    return %c0_i32, %c0_i32_0 : i32, i32
  }
  func.func @transform_3(%arg0: i32) -> (i32, i32, i32) {
    %c0_i32 = arith.constant 0 : i32
    %c0_i32_0 = arith.constant 0 : i32
    %c0_i32_1 = arith.constant 0 : i32
    %c0_i32_2 = arith.constant 0 : i32
    return %c0_i32, %c0_i32_0, %c0_i32_1 : i32, i32, i32
  }
  func.func @transform_4(%arg0: i32) -> (i32, i32) {
    %c0_i32 = arith.constant 0 : i32
    %c0_i32_0 = arith.constant 0 : i32
    %c0_i32_1 = arith.constant 0 : i32
    return %c0_i32, %c0_i32_0 : i32, i32
  }
  func.func @transform_5(%arg0: i32) -> (i32, i32, i32) {
    %c0_i32 = arith.constant 0 : i32
    %c0_i32_0 = arith.constant 0 : i32
    %c0_i32_1 = arith.constant 0 : i32
    %c0_i32_2 = arith.constant 0 : i32
    return %c0_i32, %c0_i32_0, %c0_i32_1 : i32, i32, i32
  }
  func.func @transform_6(%arg0: i32) -> (i32, i32) {
    %c0_i32 = arith.constant 0 : i32
    %c0_i32_0 = arith.constant 0 : i32
    %c0_i32_1 = arith.constant 0 : i32
    return %c0_i32, %c0_i32_0 : i32, i32
  }
  func.func @transform_7(%arg0: i32) -> (i32, i32, i32) {
    %c0_i32 = arith.constant 0 : i32
    %c0_i32_0 = arith.constant 0 : i32
    %c0_i32_1 = arith.constant 0 : i32
    %c0_i32_2 = arith.constant 0 : i32
    return %c0_i32, %c0_i32_0, %c0_i32_1 : i32, i32, i32
  }
  func.func @transform_8(%arg0: i32) -> (i32, i32) {
    %c0_i32 = arith.constant 0 : i32
    %c0_i32_0 = arith.constant 0 : i32
    %c0_i32_1 = arith.constant 0 : i32
    return %c0_i32, %c0_i32_0 : i32, i32
  }
  func.func @transform_9(%arg0: i32) -> (i32, i32) {
    %c0_i32 = arith.constant 0 : i32
    %c0_i32_0 = arith.constant 0 : i32
    %c0_i32_1 = arith.constant 0 : i32
    return %c0_i32, %c0_i32_0 : i32, i32
  }
  func.func @transform_10(%arg0: i32) -> (i32, i32) {
    %c0_i32 = arith.constant 0 : i32
    %c0_i32_0 = arith.constant 0 : i32
    %c0_i32_1 = arith.constant 0 : i32
    return %c0_i32, %c0_i32_0 : i32, i32
  }
  func.func @transform_11(%arg0: i32) -> (i32, i32) {
    %c0_i32 = arith.constant 0 : i32
    %c0_i32_0 = arith.constant 0 : i32
    %c0_i32_1 = arith.constant 0 : i32
    return %c0_i32, %c0_i32_0 : i32, i32
  }
  func.func @transform_12(%arg0: i32) -> (i32, i32) {
    %c0_i32 = arith.constant 0 : i32
    %c0_i32_0 = arith.constant 0 : i32
    %c0_i32_1 = arith.constant 0 : i32
    return %c0_i32, %c0_i32_0 : i32, i32
  }
  func.func @transform_13(%arg0: i32) -> (i32, i32) {
    %c0_i32 = arith.constant 0 : i32
    %c0_i32_0 = arith.constant 0 : i32
    return %arg0, %c0_i32 : i32, i32
  }
}

</mosaic_0001>

<bundles_post_ra>
// kernel: model3_forward.1
= control target key start
LH: loop header
LB: loop body
LE: loop exit
PB: predicated region body
PF: predicated region fallthrough
CT: control target
= control target key end

     0   :  { %s3811_s0 = inlined_call_operand.vmem [shape: f32[256,8], index: 0, kind: input, shape index: {}]   ;;  %s3812_s1 = inlined_call_operand.vmem [shape: f32[8,96], index: 1, kind: input, shape index: {}]   ;;  %s3813_s2 = inlined_call_operand.vmem [shape: f32[1,96], index: 2, kind: input, shape index: {}]   ;;  %s3814_s3 = inlined_call_operand.vmem [shape: f32[5,96,54], index: 3, kind: input, shape index: {}]   ;;  %s3815_s4 = inlined_call_operand.vmem [shape: f32[1,54], index: 4, kind: input, shape index: {}]   ;;  %s3816_s5 = inlined_call_operand.vmem [shape: f32[5,54,36], index: 5, kind: input, shape index: {}]   ;;  %s3817_s6 = inlined_call_operand.vmem [shape: f32[1,36], index: 6, kind: input, shape index: {}]   ;;  %s3818_s7 = inlined_call_operand.vmem [shape: f32[2,36,512], index: 7, kind: input, shape index: {}]   ;;  %s3819_s8 = inlined_call_operand.vmem [shape: f32[1,512], index: 8, kind: input, shape index: {}]   ;;  %s3820_s9 = inlined_call_operand.vmem [shape: f32[512,128], index: 9, kind: input, shape index: {}]   ;;  %s3821_s10 = inlined_call_operand.vmem [shape: f32[1,128], index: 10, kind: input, shape index: {}]   ;;  %s3822_s11 = inlined_call_operand.vmem [shape: f32[128,9], index: 11, kind: input, shape index: {}]   ;;  %s3823_s12 = inlined_call_operand.vmem [shape: f32[1,9], index: 12, kind: input, shape index: {}]   ;;  %s3824_s13 = inlined_call_operand.hbm [shape: f32[16,9], index: 13, kind: output, shape index: {}]  }
   0x1   :  { %3825 = sst [smem:[#allocation11_spill]] %s3811_s0 }
   0x2   :  { %3826 = sst [smem:[#allocation12_spill]] %s3812_s1 }
   0x3   :  { %18 = vsyncpa [#allocation8], 0 }
   0x4   :  { %20 = vsyncpa [#allocation8 + $0x1], 0  ;;  %s2750_s25 = smov 0   ;;  %s2752_s26 = smov 0  }
   0x5   :  { %s2754_s27 = smov 0   ;;  %s2756_s28 = smov 0  }
   0x6 LB: > { %s2771_s29 = sadd.s32 4294967295, %s2678_s28   ;;  %s2364_s30 = sadd.s32 4294967294, %s2678_s28   ;;  %s2678_s28 = sphi %s2756_s28, %s3836_s28   ;;  %s2674_s27 = sphi %s2754_s27, %s3835_s27   ;;  %s2670_s26 = sphi %s2752_s26, %s3834_s26   ;;  %s2666_s25 = sphi %s2750_s25, %s3833_s25  }
   0x7   : > { %s2775_s14 = sadd.s32 1, %s2678_s28   ;;  %s311_s15 = sadd.s32 1, %s2674_s27 }
   0x8   : > { %s308_s16 = ssub.s32 %s2678_s28, %s2775_s14  ;;  %p321_p0 = scmp.ne.s32.totalorder %s2674_s27, %s2670_s26 }
   0x9   : > { %p309_p1 = scmp.eq.s32.totalorder %s308_s16, 0  ;;  %p322_p2 = scmp.eq.s32.totalorder %s2771_s29, 1 }
   0xa   : > { %p327_p3 = scmp.ne.s32.totalorder %s2670_s26, %s2666_s25  ;;  %p328_p4 = scmp.eq.s32.totalorder %s2364_s30, 1 }
   0xb   : > { %s2786_s17 = scalar_select %p309_p1, %s2674_s27, %s311_s15  }
   0xc   : > { %p2788_p5 = por %p322_p2, %p321_p0  ;;  %p2792_p6 = por %p328_p4, %p327_p3 }
   0xd   : > { %3827 = sst [smem:[#allocation10_spill]] %s2786_s17  ;;  %p2367_p7 = scmp.ge.s32.totalorder %s2678_s28, 1 }
   0xe   : > { %p391_p8 = scmp.lt.s32.totalorder %s2678_s28, 3 }
  0x10   : > { %p392_p9 = pnand %p2367_p7, %p391_p8 }
  0x11   : > { %s3830_s1 = sld [smem:[#allocation12_spill]] (!%p392_p9)  ;;  %s2369_s22 = sshll.u32 (!%p392_p9), %s2771_s29, 4 }
  0x12   : > { %395 = sbr.rel (%p392_p9) target bundleno = 1407 (0x57f), region = 72  ;;  %p436_p10 = scmp.lt.s32.totalorder (!%p392_p9), %s2369_s22, 31 }
  0x13   : > { %s3831_s0 = sld [smem:[#allocation11_spill]] (!%p392_p9)  ;;  %s432_s24 = sand.u32 (!%p392_p9), 1, %s2670_s26  }
  0x14   : > { %s2565_s17 = sshll.u32 (!%p392_p9), %s2771_s29, 3  ;;  %s2290_s29 = scalar_lea.sflag (!%p392_p9), [#allocation8], %s432_s24 }
  0x15   : > { %s2300_s20 = scalar_lea.hbm (!%p392_p9), %s3824_s13, %s2565_s17  ;;  %s2636_s30 = scalar_lea.hbm (!%p392_p9), %s3824_s13, 16 }
  0x17   : > { %v457_v0 = vld [vmem:[%s3830_s1] sm:$0xff]  ;;  %s3838_s22 = smov (!%p436_p10, %s2369_s22), 31  ;;  %vm462_vm0 = vcmask 64512   ;;  %v2426_v14 = vld [vmem:[%s3814_s3 + $0x118] sm:$0xff]  ;;  %v2425_v18 = vld [vmem:[%s3814_s3 + $0x110] sm:$0xff]  ;;  %vm592_vm1 = vcmask 785408   ;;  %v656_v61 = vlaneseq }
  0x18   : > { %526 = vmatpush.msra.mxu0 %v457_v0  ;;  %s2370_s23 = sshll.u32 %s3838_s22, 3  ;;  %1045 = vmatpush.msra.mxu3 %v2426_v14  ;;  %v2398_v16 = vld [vmem:[%s3814_s3 + $0xb8] sm:$0xff]  ;;  %v2397_v19 = vld [vmem:[%s3814_s3 + $0xb0] sm:$0xff]  ;;  %v2424_v21 = vld [vmem:[%s3814_s3 + $0x108] sm:$0xff] }
  0x19   : > { %s2805_s15 = scalar_lea.vmem %s3831_s0, %s2370_s23  ;;  %v812_v17 = vld [vmem:[%s3814_s3 + $0x58] sm:$0xff]  ;;  %894 = vmatpush.msra.mxu1 %v2398_v16  ;;  %v811_v20 = vld [vmem:[%s3814_s3 + $0x50] sm:$0xff]  ;;  %v2396_v22 = vld [vmem:[%s3814_s3 + $0xa8] sm:$0xff]  ;;  %s2304_s0 = sshll.u32 %s2300_s20, 4  ;;  %s2305_s0 = int_to_ptr.hbm [resolvable:$true] %s2304_s0 }
  0x1a   : > { %v441_v1 = vld [vmem:[%s2805_s15] sm:$0xff]  ;;  %v442_v2 = vld [vmem:[%s2805_s15 + $0x8] sm:$0xff]  ;;  %v443_v3 = vld [vmem:[%s2805_s15 + $0x10] sm:$0xff]  ;;  %959 = vmatpush.msra.mxu2 %v812_v17  ;;  %1046 = vmatpush.msra.mxu3 %v2425_v18  ;;  %s2630_s23 = sshra.s32 %s2305_s0, 4  ;;  %s2631_s23 = int_to_ptr.hbm [resolvable:$true] %s2630_s23 }
  0x1b   : > { %2371 = vmatmul.msk.f32.vlgmr.msra.gmra.mxu0 %vm462_vm0, %v441_v1  ;;  %v444_v4 = vld [vmem:[%s2805_s15 + $0x18] sm:$0xff]  ;;  %v445_v5 = vld [vmem:[%s2805_s15 + $0x20] sm:$0xff]  ;;  %v446_v6 = vld [vmem:[%s2805_s15 + $0x28] sm:$0xff]  ;;  %895 = vmatpush.msra.mxu1 %v2397_v19  ;;  %s2632_s1 = scalar_lea.hbm %s2631_s23, 8  ;;  %p2637_p0 = scmp.lt.s32.totalorder %s2631_s23, %s3824_s13 }
  0x1c   : > { %v447_v7 = vld [vmem:[%s2805_s15 + $0x30] sm:$0xff]  ;;  %v448_v8 = vld [vmem:[%s2805_s15 + $0x38] sm:$0xff]  ;;  %v449_v9 = vld [vmem:[%s2805_s15 + $0x40] sm:$0xff]  ;;  %960 = vmatpush.msra.mxu2 %v811_v20  ;;  %1047 = vmatpush.msra.mxu3 %v2424_v21  ;;  %p2633_p11 = scmp.ne.s32.totalorder %s2631_s23, %s2632_s1  ;;  %p2638_p1 = scmp.lt.s32.totalorder %s2636_s30, %s2632_s1 }
  0x1d   : > { %v450_v10 = vld [vmem:[%s2805_s15 + $0x48] sm:$0xff]  ;;  %v451_v11 = vld [vmem:[%s2805_s15 + $0x50] sm:$0xff]  ;;  %v452_v12 = vld [vmem:[%s2805_s15 + $0x58] sm:$0xff]  ;;  %896 = vmatpush.msra.mxu1 %v2396_v22 }
  0x1e   : > { %v453_v13 = vld [vmem:[%s2805_s15 + $0x60] sm:$0xff]  ;;  %v454_v15 = vld [vmem:[%s2805_s15 + $0x68] sm:$0xff]  ;;  %v2422_v27 = vld [vmem:[%s3814_s3 + $0xf8] sm:$0xff]  ;;  %p2634_p12 = pnand %p2633_p11, %p2788_p5  ;;  %p2639_p2 = por %p2638_p1, %p2637_p0 }
  0x1f   : > { %v810_v23 = vld [vmem:[%s3814_s3 + $0x48] sm:$0xff]  ;;  %v2423_v24 = vld [vmem:[%s3814_s3 + $0x100] sm:$0xff]  ;;  %v455_v28 = vld [vmem:[%s2805_s15 + $0x70] sm:$0xff] }
  0x20   : > { %961 = vmatpush.msra.mxu2 %v810_v23  ;;  %1048 = vmatpush.msra.mxu3 %v2423_v24  ;;  %v2395_v25 = vld [vmem:[%s3814_s3 + $0xa0] sm:$0xff]  ;;  %v2394_v29 = vld [vmem:[%s3814_s3 + $0x98] sm:$0xff]  ;;  %v2421_v31 = vld [vmem:[%s3814_s3 + $0xf0] sm:$0xff]  ;;  %p2635_p13 = pneg %p2634_p12 }
  0x21   : > { %v809_v26 = vld [vmem:[%s3814_s3 + $0x40] sm:$0xff]  ;;  %897 = vmatpush.msra.mxu1 %v2395_v25  ;;  %v808_v30 = vld [vmem:[%s3814_s3 + $0x38] sm:$0xff]  ;;  %v2393_v32 = vld [vmem:[%s3814_s3 + $0x90] sm:$0xff] }
  0x22   : > { %962 = vmatpush.msra.mxu2 %v809_v26  ;;  %1049 = vmatpush.msra.mxu3 %v2422_v27  ;;  %v807_v33 = vld [vmem:[%s3814_s3 + $0x30] sm:$0xff]  ;;  %v2420_v34 = vld [vmem:[%s3814_s3 + $0xe8] sm:$0xff]  ;;  %v2419_v37 = vld [vmem:[%s3814_s3 + $0xe0] sm:$0xff]  ;;  %p2640_p3 = pnand %p2639_p2, %p2635_p13 }
  0x23   : > { %2372 = vmatmul.msk.f32.gmra.mxu0 %vm462_vm0, %v442_v2  ;;  %898 = vmatpush.msra.mxu1 %v2394_v29  ;;  %v2392_v35 = vld [vmem:[%s3814_s3 + $0x88] sm:$0xff]  ;;  %v2391_v38 = vld [vmem:[%s3814_s3 + $0x80] sm:$0xff]  ;;  %v2418_v40 = vld [vmem:[%s3814_s3 + $0xd8] sm:$0xff]  ;;  %v2957_v2 = vshrl.u32 %v656_v61, 7 }
  0x24   : > { %963 = vmatpush.msra.mxu2 %v808_v30  ;;  %1050 = vmatpush.msra.mxu3 %v2421_v31  ;;  %v806_v36 = vld [vmem:[%s3814_s3 + $0x28] sm:$0xff]  ;;  %v805_v39 = vld [vmem:[%s3814_s3 + $0x20] sm:$0xff]  ;;  %v456_v41 = vld [vmem:[%s2805_s15 + $0x78] sm:$0xff]  ;;  %s2368_s15 = sshll.u32 %s432_s24, 3 }
  0x25   : > { %899 = vmatpush.msra.mxu1 %v2393_v32  ;;  %v2390_v42 = vld [vmem:[%s3814_s3 + $0x78] sm:$0xff]  ;;  %v2417_v44 = vld [vmem:[%s3814_s3 + $0xd0] sm:$0xff]  ;;  %v2416_v47 = vld [vmem:[%s3814_s3 + $0xc8] sm:$0xff]  ;;  %v2973_v18 = vadd.s32 8, %v2957_v2  ;;  %s434_s21 = scalar_lea.vmem [#allocation7], %s2368_s15 }
  0x26   : > { %964 = vmatpush.msra.mxu2 %v807_v33  ;;  %1051 = vmatpush.msra.mxu3 %v2420_v34  ;;  %v804_v43 = vld [vmem:[%s3814_s3 + $0x18] sm:$0xff]  ;;  %v2389_v45 = vld [vmem:[%s3814_s3 + $0x70] sm:$0xff]  ;;  %v2388_v48 = vld [vmem:[%s3814_s3 + $0x68] sm:$0xff]  ;;  %v2989_v34 = vadd.s32 16, %v2957_v2  ;;  %s2302_s22 = sshll.u32 %s434_s21, 4  ;;  %s2303_s22 = int_to_ptr.vmem [resolvable:$true] %s2302_s22 }
  0x27   : > { %900 = vmatpush.msra.mxu1 %v2392_v35  ;;  %v803_v46 = vld [vmem:[%s3814_s3 + $0x10] sm:$0xff]  ;;  %v802_v49 = vld [vmem:[%s3814_s3 + $0x8] sm:$0xff]  ;;  %v2941_v50 = vld [vmem:[%s3813_s2] ss:$0 sm:$0xff]  ;;  %v2978_v21 = vand.u32 7, %v2973_v18 }
  0x28   : > { %965 = vmatpush.msra.mxu2 %v806_v36  ;;  %1052 = vmatpush.msra.mxu3 %v2419_v37  ;;  %v2415_v51 = vld [vmem:[%s3814_s3 + $0xc0] sm:$0xff]  ;;  %v2994_v37 = vand.u32 7, %v2989_v34 }
  0x29   : > { %901 = vmatpush.msra.mxu1 %v2391_v38  ;;  %v2387_v52 = vld [vmem:[%s3814_s3 + $0x60] sm:$0xff]  ;;  %vm822_vm4 = vcmp.ge.s32.totalorder %v2978_v21, 1  ;;  %vm770_vm5 = vcmp.ge.s32.totalorder %v2978_v21, 2 }
  0x2a   : > { %966 = vmatpush.msra.mxu2 %v805_v39  ;;  %1053 = vmatpush.msra.mxu3 %v2418_v40  ;;  %v801_v53 = vld [vmem:[%s3814_s3] sm:$0xff]  ;;  %vm823_vm6 = vcmp.ge.s32.totalorder %v2994_v37, 1  ;;  %vm771_vm7 = vcmp.ge.s32.totalorder %v2994_v37, 2 }
  0x2b   : > { %2373 = vmatmul.msk.f32.gmra.mxu0 %vm462_vm0, %v443_v3  ;;  %902 = vmatpush.msra.mxu1 %v2390_v42 }
  0x2c   : > { %967 = vmatpush.msra.mxu2 %v804_v43  ;;  %1054 = vmatpush.msra.mxu3 %v2417_v44 }
  0x2d   : > { %903 = vmatpush.msra.mxu1 %v2389_v45 }
  0x2e   : > { %968 = vmatpush.msra.mxu2 %v803_v46  ;;  %1055 = vmatpush.msra.mxu3 %v2416_v47 }
  0x2f   : > { %904 = vmatpush.msra.mxu1 %v2388_v48 }
  0x30   : > { %969 = vmatpush.msra.mxu2 %v802_v49  ;;  %1056 = vmatpush.msra.mxu3 %v2415_v51  ;;  %v3005_v51 = vadd.s32 24, %v2957_v2 }
  0x31   : > { %905 = vmatpush.msra.mxu1 %v2387_v52  ;;  %v2466_v52 = vld [vmem:[%s3814_s3 + $0x1d8] sm:$0xff] }
  0x32   : > { %970 = vmatpush.msra.mxu2 %v801_v53 }
  0x33   : > { %2374 = vmatmul.msk.f32.gmra.mxu0 %vm462_vm0, %v444_v4 }
  0x34   : > { %1297 = vmatpush.msrb.mxu2 %v2466_v52  ;;  %v2456_v52 = vld [vmem:[%s3814_s3 + $0x188] sm:$0xff] }
  0x3b   : > { %2375 = vmatmul.msk.f32.gmra.mxu0 %vm462_vm0, %v445_v5  ;;  %v2962_v5 = vand.u32 7, %v2957_v2 }
  0x3d   : > { %vm821_vm2 = vcmp.ge.s32.totalorder %v2962_v5, 1  ;;  %vm769_vm3 = vcmp.ge.s32.totalorder %v2962_v5, 2 }
  0x43   : > { %2376 = vmatmul.msk.f32.gmra.mxu0 %vm462_vm0, %v446_v6 }
  0x4b   : > { %2377 = vmatmul.msk.f32.gmra.mxu0 %vm462_vm0, %v447_v7 }
  0x53   : > { %2378 = vmatmul.msk.f32.gmra.mxu0 %vm462_vm0, %v448_v8 }
  0x5b   : > { %2379 = vmatmul.msk.f32.gmra.mxu0 %vm462_vm0, %v449_v9 }
  0x63   : > { %2380 = vmatmul.msk.f32.gmra.mxu0 %vm462_vm0, %v450_v10 }
  0x6b   : > { %2381 = vmatmul.msk.f32.gmra.mxu0 %vm462_vm0, %v451_v11 }
  0x73   : > { %2382 = vmatmul.msk.f32.gmra.mxu0 %vm462_vm0, %v452_v12 }
  0x7b   : > { %2383 = vmatmul.msk.f32.gmra.mxu0 %vm462_vm0, %v453_v13 }
  0x83   : > { %2384 = vmatmul.msk.f32.gmra.mxu0 %vm462_vm0, %v454_v15 }
  0x8b   : > { %2385 = vmatmul.msk.f32.gmra.mxu0 %vm462_vm0, %v455_v28 }
  0x93   : > { %2386 = vmatmul.msk.f32.gmra.mxu0 %vm462_vm0, %v456_v41 }
  0x98   : > { %v528_v54 = vpop.f32.mrf.mxu0 }
  0x99   : > { %v529_v55 = vadd.f32 %v2941_v50, %v528_v54  ;;  %v2446_v54 = vld [vmem:[%s3814_s3 + $0x178] sm:$0xff] }
  0x9a   : > { %1171 = vmatpush.msrb.mxu1 %v2446_v54 }
  0x9b   : > { %v576_v56 = vmax.f32 %v529_v55, 0.0  ;;  %v2465_v55 = vld [vmem:[%s3814_s3 + $0x1d0] sm:$0xff] }
  0x9c   : > { %1298 = vmatpush.msrb.mxu2 %v2465_v55 }
  0x9d   : > { %593 = vst.msk [vmem:[#allocation2] sm:$0xff] %vm592_vm1, %v576_v56  ;;  %v2445_v56 = vld [vmem:[%s3814_s3 + $0x170] sm:$0xff] }
  0x9e   : > { %1172 = vmatpush.msrb.mxu1 %v2445_v56 }
  0xa0   : > { %v531_v57 = vpop.f32.mrf.mxu0 }
  0xa1   : > { %v532_v58 = vadd.f32 %v2941_v50, %v531_v57  ;;  %v2464_v57 = vld [vmem:[%s3814_s3 + $0x1c8] sm:$0xff] }
  0xa2   : > { %1299 = vmatpush.msrb.mxu2 %v2464_v57 }
  0xa3   : > { %v577_v59 = vmax.f32 %v532_v58, 0.0  ;;  %v2444_v58 = vld [vmem:[%s3814_s3 + $0x168] sm:$0xff] }
  0xa4   : > { %1173 = vmatpush.msrb.mxu1 %v2444_v58 }
  0xa5   : > { %594 = vst.msk [vmem:[#allocation2 + $0x8] sm:$0xff] %vm592_vm1, %v577_v59 }
  0xa8   : > { %v534_v60 = vpop.f32.mrf.mxu0 }
  0xa9   : > { %v535_v62 = vadd.f32 %v2941_v50, %v534_v60  ;;  %v3028_v60 = vand.u32 7, %v3005_v51 }
  0xab   : > { %v578_v63 = vmax.f32 %v535_v62, 0.0  ;;  %vm824_vm8 = vcmp.ge.s32.totalorder %v3028_v60, 1  ;;  %vm772_vm9 = vcmp.ge.s32.totalorder %v3028_v60, 2 }
  0xac   : > { %v609_v0 = vld [vmem:[#allocation2] ss:$2 sm:$0xff]  ;;  %v625_v1 = vld [vmem:[#allocation2 + $0x1] ss:$2 sm:$0xff] }
  0xad   : > { %595 = vst.msk [vmem:[#allocation2 + $0x10] sm:$0xff] %vm592_vm1, %v578_v63  ;;  %v640_v3 = vmax.f32 %v609_v0, %v625_v1 }
  0xaf   : > { %648 = vst.msk [vmem:[#allocation3 + $0x8] sm:$0xff] %vm592_vm1, %v640_v3 }
  0xb0   : > { %v537_v4 = vpop.f32.mrf.mxu0 }
  0xb1   : > { %v538_v6 = vadd.f32 %v2941_v50, %v537_v4 }
  0xb3   : > { %v579_v7 = vmax.f32 %v538_v6, 0.0 }
  0xb5   : > { %596 = vst.msk [vmem:[#allocation2 + $0x18] sm:$0xff] %vm592_vm1, %v579_v7 }
  0xb6   : > { %v996_v8 = vld [vmem:[#allocation3 + $0x8] sm:$0xff] }
  0xb7   : > { %v813_v9 = vld [vmem:[#allocation3 + $0x7] sm:$0xff]  ;;  %2427 = vmatmul.msk.f32.vlgmr.msra.gmra.mxu3 %vm592_vm1, %v996_v8 }
  0xb8   : > { %v761_v10 = vld [vmem:[#allocation3 + $0x6] sm:$0xff]  ;;  %v845_v11 = vsel %vm821_vm2, %v813_v9, 0.0  ;;  %v540_v13 = vpop.f32.mrf.mxu0 }
  0xb9   : > { %v793_v12 = vsel %vm769_vm3, %v761_v10, 0.0  ;;  %2399 = vmatmul.msk.f32.vlgmr.msra.gmra.mxu1 %vm592_vm1, %v845_v11  ;;  %v541_v14 = vadd.f32 %v2941_v50, %v540_v13  ;;  %v661_v11 = vadd.s32 32, %v2957_v2  ;;  %vm1098_vm3 = vcmp.lt.s32.totalorder %v2962_v5, 7 }
  0xba   : > { %2407 = vmatmul.msk.f32.vlgmr.msra.gmra.mxu2 %vm592_vm1, %v793_v12  ;;  %v2463_v12 = vld [vmem:[%s3814_s3 + $0x1c0] sm:$0xff] }
  0xbb   : > { %v580_v15 = vmax.f32 %v541_v14, 0.0  ;;  %1300 = vmatpush.msrb.mxu2 %v2463_v12  ;;  %v2443_v14 = vld [vmem:[%s3814_s3 + $0x160] sm:$0xff] }
  0xbc   : > { %v611_v16 = vld [vmem:[#allocation2 + $0x10] ss:$2 sm:$0xff]  ;;  %v627_v17 = vld [vmem:[#allocation2 + $0x11] ss:$2 sm:$0xff]  ;;  %1174 = vmatpush.msrb.mxu1 %v2443_v14 }
  0xbd   : > { %597 = vst.msk [vmem:[#allocation2 + $0x20] sm:$0xff] %vm592_vm1, %v580_v15  ;;  %v641_v19 = vmax.f32 %v611_v16, %v627_v17  ;;  %v2462_v15 = vld [vmem:[%s3814_s3 + $0x1b8] sm:$0xff]  ;;  %v2461_v17 = vld [vmem:[%s3814_s3 + $0x1b0] sm:$0xff] }
  0xbe   : > { %v2442_v16 = vld [vmem:[%s3814_s3 + $0x158] sm:$0xff]  ;;  %1301 = vmatpush.msrb.mxu2 %v2462_v15 }
  0xbf   : > { %649 = vst.msk [vmem:[#allocation3 + $0x10] sm:$0xff] %vm592_vm1, %v641_v19  ;;  %v2441_v19 = vld [vmem:[%s3814_s3 + $0x150] sm:$0xff]  ;;  %1175 = vmatpush.msrb.mxu1 %v2442_v16 }
  0xc0   : > { %v543_v20 = vpop.f32.mrf.mxu0  ;;  %1302 = vmatpush.msrb.mxu2 %v2461_v17 }
  0xc1   : > { %v544_v22 = vadd.f32 %v2941_v50, %v543_v20  ;;  %1176 = vmatpush.msrb.mxu1 %v2441_v19  ;;  %v664_v19 = vadd.s32 56, %v2957_v2 }
  0xc3   : > { %v581_v23 = vmax.f32 %v544_v22, 0.0  ;;  %v3059_v22 = vand.u32 7, %v661_v11 }
  0xc5   : > { %598 = vst.msk [vmem:[#allocation2 + $0x28] sm:$0xff] %vm592_vm1, %v581_v23  ;;  %vm825_vm10 = vcmp.ge.s32.totalorder %v3059_v22, 1  ;;  %vm773_vm11 = vcmp.ge.s32.totalorder %v3059_v22, 2 }
  0xc6   : > { %v997_v24 = vld [vmem:[#allocation3 + $0x10] sm:$0xff] }
  0xc7   : > { %v814_v25 = vld [vmem:[#allocation3 + $0xf] sm:$0xff]  ;;  %2428 = vmatmul.msk.f32.gmra.mxu3 %vm592_vm1, %v997_v24 }
  0xc8   : > { %v762_v26 = vld [vmem:[#allocation3 + $0xe] sm:$0xff]  ;;  %v846_v27 = vsel %vm822_vm4, %v814_v25, 0.0  ;;  %v546_v29 = vpop.f32.mrf.mxu0  ;;  %vm1224_vm4 = vcmp.lt.s32.totalorder %v2962_v5, 6 }
  0xc9   : > { %v794_v28 = vsel %vm770_vm5, %v762_v26, 0.0  ;;  %2400 = vmatmul.msk.f32.gmra.mxu1 %vm592_vm1, %v846_v27  ;;  %v547_v30 = vadd.f32 %v2941_v50, %v546_v29  ;;  %vm1099_vm5 = vcmp.lt.s32.totalorder %v2978_v21, 7 }
  0xca   : > { %2408 = vmatmul.msk.f32.gmra.mxu2 %vm592_vm1, %v794_v28 }
  0xcb   : > { %v582_v31 = vmax.f32 %v547_v30, 0.0 }
  0xcc   : > { %v613_v32 = vld [vmem:[#allocation2 + $0x20] ss:$2 sm:$0xff]  ;;  %v629_v33 = vld [vmem:[#allocation2 + $0x21] ss:$2 sm:$0xff] }
  0xcd   : > { %599 = vst.msk [vmem:[#allocation2 + $0x30] sm:$0xff] %vm592_vm1, %v582_v31  ;;  %v642_v35 = vmax.f32 %v613_v32, %v629_v33 }
  0xcf   : > { %650 = vst.msk [vmem:[#allocation3 + $0x18] sm:$0xff] %vm592_vm1, %v642_v35 }
  0xd0   : > { %v549_v36 = vpop.f32.mrf.mxu0 }
  0xd1   : > { %v550_v38 = vadd.f32 %v2941_v50, %v549_v36  ;;  %v662_v36 = vadd.s32 40, %v2957_v2 }
  0xd3   : > { %v583_v39 = vmax.f32 %v550_v38, 0.0  ;;  %v2460_v38 = vld [vmem:[%s3814_s3 + $0x1a8] sm:$0xff] }
  0xd4   : > { %1303 = vmatpush.msrb.mxu2 %v2460_v38 }
  0xd5   : > { %600 = vst.msk [vmem:[#allocation2 + $0x38] sm:$0xff] %vm592_vm1, %v583_v39 }
  0xd6   : > { %v998_v40 = vld [vmem:[#allocation3 + $0x18] sm:$0xff] }
  0xd7   : > { %v815_v41 = vld [vmem:[#allocation3 + $0x17] sm:$0xff]  ;;  %2429 = vmatmul.msk.f32.gmra.mxu3 %vm592_vm1, %v998_v40  ;;  %v2440_v40 = vld [vmem:[%s3814_s3 + $0x148] sm:$0xff] }
  0xd8   : > { %v763_v42 = vld [vmem:[#allocation3 + $0x16] sm:$0xff]  ;;  %v847_v43 = vsel %vm823_vm6, %v815_v41, 0.0  ;;  %v552_v45 = vpop.f32.mrf.mxu0  ;;  %v2459_v41 = vld [vmem:[%s3814_s3 + $0x1a0] sm:$0xff]  ;;  %1177 = vmatpush.msrb.mxu1 %v2440_v40  ;;  %vm1225_vm6 = vcmp.lt.s32.totalorder %v2978_v21, 6 }
  0xd9   : > { %v795_v44 = vsel %vm771_vm7, %v763_v42, 0.0  ;;  %2401 = vmatmul.msk.f32.gmra.mxu1 %vm592_vm1, %v847_v43  ;;  %v553_v46 = vadd.f32 %v2941_v50, %v552_v45  ;;  %v2439_v42 = vld [vmem:[%s3814_s3 + $0x140] sm:$0xff]  ;;  %v2458_v43 = vld [vmem:[%s3814_s3 + $0x198] sm:$0xff]  ;;  %1304 = vmatpush.msrb.mxu2 %v2459_v41  ;;  %vm1100_vm7 = vcmp.lt.s32.totalorder %v2994_v37, 7 }
  0xda   : > { %2409 = vmatmul.msk.f32.gmra.mxu2 %vm592_vm1, %v795_v44  ;;  %v2438_v44 = vld [vmem:[%s3814_s3 + $0x138] sm:$0xff]  ;;  %1178 = vmatpush.msrb.mxu1 %v2439_v42 }
  0xdb   : > { %v584_v47 = vmax.f32 %v553_v46, 0.0  ;;  %v3090_v46 = vand.u32 7, %v662_v36  ;;  %1305 = vmatpush.msrb.mxu2 %v2458_v43 }
  0xdc   : > { %v615_v48 = vld [vmem:[#allocation2 + $0x30] ss:$2 sm:$0xff]  ;;  %v631_v49 = vld [vmem:[#allocation2 + $0x31] ss:$2 sm:$0xff]  ;;  %1179 = vmatpush.msrb.mxu1 %v2438_v44 }
  0xdd   : > { %601 = vst.msk [vmem:[#allocation2 + $0x40] sm:$0xff] %vm592_vm1, %v584_v47  ;;  %v643_v53 = vmax.f32 %v615_v48, %v631_v49  ;;  %v2457_v47 = vld [vmem:[%s3814_s3 + $0x190] sm:$0xff]  ;;  %vm826_vm12 = vcmp.ge.s32.totalorder %v3090_v46, 1  ;;  %vm774_vm13 = vcmp.ge.s32.totalorder %v3090_v46, 2 }
  0xde   : > { %v2437_v49 = vld [vmem:[%s3814_s3 + $0x130] sm:$0xff]  ;;  %1306 = vmatpush.msrb.mxu2 %v2457_v47 }
  0xdf   : > { %651 = vst.msk [vmem:[#allocation3 + $0x20] sm:$0xff] %vm592_vm1, %v643_v53  ;;  %1180 = vmatpush.msrb.mxu1 %v2437_v49 }
  0xe0   : > { %v555_v59 = vpop.f32.mrf.mxu0  ;;  %1307 = vmatpush.msrb.mxu2 %v2456_v52 }
  0xe1   : > { %v556_v61 = vadd.f32 %v2941_v50, %v555_v59 }
  0xe3   : > { %v585_v62 = vmax.f32 %v556_v61, 0.0  ;;  %v2436_v61 = vld [vmem:[%s3814_s3 + $0x128] sm:$0xff] }
  0xe4   : > { %1181 = vmatpush.msrb.mxu1 %v2436_v61 }
  0xe5   : > { %602 = vst.msk [vmem:[#allocation2 + $0x48] sm:$0xff] %vm592_vm1, %v585_v62  ;;  %v2455_v62 = vld [vmem:[%s3814_s3 + $0x180] sm:$0xff] }
  0xe6   : > { %v999_v63 = vld [vmem:[#allocation3 + $0x20] sm:$0xff]  ;;  %1308 = vmatpush.msrb.mxu2 %v2455_v62 }
  0xe7   : > { %v816_v0 = vld [vmem:[#allocation3 + $0x1f] sm:$0xff]  ;;  %2430 = vmatmul.msk.f32.gmra.mxu3 %vm592_vm1, %v999_v63 }
  0xe8   : > { %v764_v1 = vld [vmem:[#allocation3 + $0x1e] sm:$0xff]  ;;  %v848_v3 = vsel %vm824_vm8, %v816_v0, 0.0  ;;  %v558_v6 = vpop.f32.mrf.mxu0  ;;  %vm1226_vm8 = vcmp.lt.s32.totalorder %v2994_v37, 6 }
  0xe9   : > { %v796_v4 = vsel %vm772_vm9, %v764_v1, 0.0  ;;  %2402 = vmatmul.msk.f32.gmra.mxu1 %vm592_vm1, %v848_v3  ;;  %v559_v7 = vadd.f32 %v2941_v50, %v558_v6  ;;  %v2435_v63 = vld [vmem:[%s3814_s3 + $0x120] sm:$0xff]  ;;  %v663_v6 = vadd.s32 48, %v2957_v2  ;;  %vm1101_vm9 = vcmp.lt.s32.totalorder %v3028_v60, 7 }
  0xea   : > { %2410 = vmatmul.msk.f32.gmra.mxu2 %vm592_vm1, %v796_v4  ;;  %1182 = vmatpush.msrb.mxu1 %v2435_v63  ;;  %v1218_v5 = vld [vmem:[#allocation3 + $0x1a] sm:$0xff] }
  0xeb   : > { %v586_v8 = vmax.f32 %v559_v7, 0.0  ;;  %v1250_v41 = vsel %vm1226_vm8, %v1218_v5, 0.0  ;;  %v2492_v5 = vld [vmem:[%s3816_s5 + $0x70] sm:$0xff] }
  0xec   : > { %v617_v9 = vld [vmem:[#allocation2 + $0x40] ss:$2 sm:$0xff]  ;;  %v633_v10 = vld [vmem:[#allocation2 + $0x41] ss:$2 sm:$0xff] }
  0xed   : > { %603 = vst.msk [vmem:[#allocation2 + $0x50] sm:$0xff] %vm592_vm1, %v586_v8  ;;  %v644_v13 = vmax.f32 %v617_v9, %v633_v10  ;;  %v3121_v9 = vand.u32 7, %v663_v6 }
  0xef   : > { %652 = vst.msk [vmem:[#allocation3 + $0x28] sm:$0xff] %vm592_vm1, %v644_v13  ;;  %vm827_vm14 = vcmp.ge.s32.totalorder %v3121_v9, 1  ;;  %vm775_vm15 = vcmp.ge.s32.totalorder %v3121_v9, 2 }
  0xf0   : > { %v561_v20 = vpop.f32.mrf.mxu0 }
  0xf1   : > { %v562_v23 = vadd.f32 %v2941_v50, %v561_v20 }
  0xf3   : > { %v587_v24 = vmax.f32 %v562_v23, 0.0  ;;  %v3132_v23 = vand.u32 7, %v664_v19  ;;  %v2479_v19 = vld [vmem:[%s3816_s5 + $0x58] sm:$0xff] }
  0xf5   : > { %604 = vst.msk [vmem:[#allocation2 + $0x58] sm:$0xff] %vm592_vm1, %v587_v24  ;;  %vm828_vm0 = vcmp.ge.s32.totalorder %v3132_v23, 1  ;;  %vm776_vm2 = vcmp.ge.s32.totalorder %v3132_v23, 2 }
  0xf6   : > { %v1000_v25 = vld [vmem:[#allocation3 + $0x28] sm:$0xff] }
  0xf7   : > { %v817_v26 = vld [vmem:[#allocation3 + $0x27] sm:$0xff]  ;;  %2431 = vmatmul.msk.f32.gmra.mxu3 %vm592_vm1, %v1000_v25 }
  0xf8   : > { %v765_v27 = vld [vmem:[#allocation3 + $0x26] sm:$0xff]  ;;  %v849_v28 = vsel %vm825_vm10, %v817_v26, 0.0  ;;  %v564_v30 = vpop.f32.mrf.mxu0  ;;  %vm1227_vm10 = vcmp.lt.s32.totalorder %v3028_v60, 6 }
  0xf9   : > { %v797_v29 = vsel %vm773_vm11, %v765_v27, 0.0  ;;  %2403 = vmatmul.msk.f32.gmra.mxu1 %vm592_vm1, %v849_v28  ;;  %v565_v31 = vadd.f32 %v2941_v50, %v564_v30  ;;  %v1216_v30 = vld [vmem:[#allocation3 + $0xa] sm:$0xff]  ;;  %v1093_v42 = vld [vmem:[#allocation3 + $0x21] sm:$0xff]  ;;  %vm1102_vm11 = vcmp.lt.s32.totalorder %v3059_v22, 7 }
  0xfa   : > { %2411 = vmatmul.msk.f32.gmra.mxu2 %vm592_vm1, %v797_v29  ;;  %v1090_v29 = vld [vmem:[#allocation3 + $0x9] sm:$0xff]  ;;  %v1125_v43 = vsel %vm1101_vm9, %v1093_v42, 0.0 }
  0xfb   : > { %v588_v32 = vmax.f32 %v565_v31, 0.0  ;;  %v1122_v31 = vsel %vm1098_vm3, %v1090_v29, 0.0  ;;  %v1219_v21 = vld [vmem:[#allocation3 + $0x22] sm:$0xff]  ;;  %vm1231_vm3 = vcmp.lt.s32.totalorder %v3132_v23, 6 }
  0xfc   : > { %v619_v33 = vld [vmem:[#allocation2 + $0x50] ss:$2 sm:$0xff]  ;;  %v635_v35 = vld [vmem:[#allocation2 + $0x51] ss:$2 sm:$0xff]  ;;  %v1251_v44 = vsel %vm1227_vm10, %v1219_v21, 0.0  ;;  %v2494_v29 = vld [vmem:[%s3816_s5 + $0x80] sm:$0xff] }
  0xfd   : > { %605 = vst.msk [vmem:[#allocation2 + $0x60] sm:$0xff] %vm592_vm1, %v588_v32  ;;  %v645_v39 = vmax.f32 %v619_v33, %v635_v35  ;;  %v1248_v32 = vsel %vm1224_vm4, %v1216_v30, 0.0  ;;  %v1091_v33 = vld [vmem:[#allocation3 + $0x11] sm:$0xff]  ;;  %vm1509_vm4 = vcmask 1045504   ;;  %v2477_v30 = vld [vmem:[%s3816_s5 + $0x48] sm:$0xff] }
  0xfe   : > { %v1217_v35 = vld [vmem:[#allocation3 + $0x12] sm:$0xff]  ;;  %v1123_v36 = vsel %vm1099_vm5, %v1091_v33, 0.0 }
  0xff   : > { %653 = vst.msk [vmem:[#allocation3 + $0x30] sm:$0xff] %vm592_vm1, %v645_v39  ;;  %v1249_v38 = vsel %vm1225_vm6, %v1217_v35, 0.0  ;;  %v1092_v39 = vld [vmem:[#allocation3 + $0x19] sm:$0xff] }
 0x100   : > { %v567_v45 = vpop.f32.mrf.mxu0  ;;  %v1124_v40 = vsel %vm1100_vm7, %v1092_v39, 0.0  ;;  %v2493_v33 = vld [vmem:[%s3816_s5 + $0x78] sm:$0xff]  ;;  %v2476_v35 = vld [vmem:[%s3816_s5 + $0x40] sm:$0xff] }
 0x101   : > { %v568_v48 = vadd.f32 %v2941_v50, %v567_v45 }
 0x103   : > { %v589_v53 = vmax.f32 %v568_v48, 0.0 }
 0x105   : > { %606 = vst.msk [vmem:[#allocation2 + $0x68] sm:$0xff] %vm592_vm1, %v589_v53 }
 0x106   : > { %v1001_v54 = vld [vmem:[#allocation3 + $0x30] sm:$0xff] }
 0x107   : > { %v818_v55 = vld [vmem:[#allocation3 + $0x2f] sm:$0xff]  ;;  %2432 = vmatmul.msk.f32.gmra.mxu3 %vm592_vm1, %v1001_v54 }
 0x108   : > { %v766_v56 = vld [vmem:[#allocation3 + $0x2e] sm:$0xff]  ;;  %v850_v57 = vsel %vm826_vm12, %v818_v55, 0.0  ;;  %v570_v59 = vpop.f32.mrf.mxu0  ;;  %vm1228_vm12 = vcmp.lt.s32.totalorder %v3059_v22, 6 }
 0x109   : > { %v798_v58 = vsel %vm774_vm13, %v766_v56, 0.0  ;;  %2404 = vmatmul.msk.f32.gmra.mxu1 %vm592_vm1, %v850_v57  ;;  %v571_v0 = vadd.f32 %v2941_v50, %v570_v59  ;;  %v1094_v45 = vld [vmem:[#allocation3 + $0x29] sm:$0xff]  ;;  %vm1103_vm13 = vcmp.lt.s32.totalorder %v3090_v46, 7 }
 0x10a   : > { %2412 = vmatmul.msk.f32.gmra.mxu2 %vm592_vm1, %v798_v58  ;;  %v1220_v37 = vld [vmem:[#allocation3 + $0x2a] sm:$0xff]  ;;  %v1126_v47 = vsel %vm1102_vm11, %v1094_v45, 0.0 }
 0x10b   : > { %v590_v1 = vmax.f32 %v571_v0, 0.0  ;;  %v1252_v48 = vsel %vm1228_vm12, %v1220_v37, 0.0  ;;  %v2498_v0 = vld [vmem:[%s3816_s5 + $0xa0] sm:$0x3f]  ;;  %v2522_v45 = vld [vmem:[%s3816_s5 + $0x110] sm:$0x3f] }
 0x10c   : > { %v621_v3 = vld [vmem:[#allocation2 + $0x60] ss:$2 sm:$0xff]  ;;  %v637_v4 = vld [vmem:[#allocation2 + $0x61] ss:$2 sm:$0xff]  ;;  %2499 = vmatpush.msk.msrb.mxu0 %vm1509_vm4, %v2498_v0  ;;  %v2510_v37 = vld [vmem:[%s3816_s5 + $0xd8] sm:$0x3f]  ;;  %2523 = vmatpush.msk.msra.mxu2 %vm1509_vm4, %v2522_v45 }
 0x10d   : > { %607 = vst.msk [vmem:[#allocation2 + $0x70] sm:$0xff] %vm592_vm1, %v590_v1  ;;  %v646_v7 = vmax.f32 %v621_v3, %v637_v4  ;;  %2511 = vmatpush.msk.msra.mxu1 %vm1509_vm4, %v2510_v37 }
 0x10f   : > { %654 = vst.msk [vmem:[#allocation3 + $0x38] sm:$0xff] %vm592_vm1, %v646_v7  ;;  %v2497_v7 = vld [vmem:[%s3816_s5 + $0x98] sm:$0xff] }
 0x110   : > { %v573_v8 = vpop.f32.mrf.mxu0  ;;  %1623 = vmatpush.msrb.mxu0 %v2497_v7 }
 0x111   : > { %v574_v10 = vadd.f32 %v2941_v50, %v573_v8 }
 0x113   : > { %v591_v11 = vmax.f32 %v574_v10, 0.0  ;;  %v2481_v10 = vld [vmem:[%s3816_s5 + $0x68] sm:$0x3f] }
 0x114   : > { %2482 = vmatpush.msk.msrb.mxu3 %vm1509_vm4, %v2481_v10 }
 0x115   : > { %608 = vst.msk [vmem:[#allocation2 + $0x78] sm:$0xff] %vm592_vm1, %v591_v11 }
 0x116   : > { %v1002_v12 = vld [vmem:[#allocation3 + $0x38] sm:$0xff] }
 0x117   : > { %v819_v13 = vld [vmem:[#allocation3 + $0x37] sm:$0xff]  ;;  %2433 = vmatmul.msk.f32.gmra.mxu3 %vm592_vm1, %v1002_v12 }
 0x118   : > { %v767_v14 = vld [vmem:[#allocation3 + $0x36] sm:$0xff]  ;;  %v851_v15 = vsel %vm827_vm14, %v819_v13, 0.0  ;;  %vm1229_vm14 = vcmp.lt.s32.totalorder %v3090_v46, 6  ;;  %v2480_v13 = vld [vmem:[%s3816_s5 + $0x60] sm:$0xff] }
 0x119   : > { %v799_v16 = vsel %vm775_vm15, %v767_v14, 0.0  ;;  %2405 = vmatmul.msk.f32.gmra.mxu1 %vm592_vm1, %v851_v15  ;;  %v1095_v49 = vld [vmem:[#allocation3 + $0x31] sm:$0xff]  ;;  %vm1104_vm15 = vcmp.lt.s32.totalorder %v3121_v9, 7  ;;  %1523 = vmatpush.msrb.mxu3 %v2480_v13 }
 0x11a   : > { %2413 = vmatmul.msk.f32.gmra.mxu2 %vm592_vm1, %v799_v16  ;;  %v1221_v60 = vld [vmem:[#allocation3 + $0x32] sm:$0xff]  ;;  %v1127_v52 = vsel %vm1103_vm13, %v1095_v49, 0.0  ;;  %v2521_v49 = vld [vmem:[%s3816_s5 + $0x108] sm:$0xff] }
 0x11b   : > { %v1253_v53 = vsel %vm1229_vm14, %v1221_v60, 0.0  ;;  %v2496_v14 = vld [vmem:[%s3816_s5 + $0x90] sm:$0xff]  ;;  %1524 = vmatpush.msrb.mxu3 %v2479_v19  ;;  %1775 = vmatpush.msra.mxu2 %v2521_v49  ;;  %v2516_v19 = vld [vmem:[%s3816_s5 + $0xe0] sm:$0xff]  ;;  %v1465_v49 = vld [vmem:[%s3816_s5 + $0x18] sm:$0xff] }
 0x11c   : > { %v623_v17 = vld [vmem:[#allocation2 + $0x70] ss:$2 sm:$0xff]  ;;  %v639_v50 = vld [vmem:[#allocation2 + $0x71] ss:$2 sm:$0xff]  ;;  %1624 = vmatpush.msrb.mxu0 %v2496_v14  ;;  %v2504_v14 = vld [vmem:[%s3816_s5 + $0xa8] sm:$0xff] }
 0x11d   : > { %v647_v20 = vmax.f32 %v623_v17, %v639_v50 }
 0x11f   : > { %655 = vst.msk [vmem:[#allocation3 + $0x40] sm:$0xff] %vm592_vm1, %v647_v20  ;;  %v2478_v20 = vld [vmem:[%s3816_s5 + $0x50] sm:$0xff] }
 0x120   : > { %1525 = vmatpush.msrb.mxu3 %v2478_v20 }
 0x122   : > { %1526 = vmatpush.msrb.mxu3 %v2477_v30 }
 0x124   : > { %1527 = vmatpush.msrb.mxu3 %v2476_v35  ;;  %v3296_v35 = vand.u32 3, %v2957_v2  ;;  %v1467_v2 = vld [vmem:[%s3816_s5 + $0x28] sm:$0xff] }
 0x126   : > { %v1003_v24 = vld [vmem:[#allocation3 + $0x40] sm:$0xff]  ;;  %vm1473_vm5 = vcmp.ge.s32.totalorder %v3296_v35, 1  ;;  %vm1650_vm7 = vcmp.lt.s32.totalorder %v3296_v35, 3  ;;  %vm1726_vm8 = vcmp.lt.s32.totalorder %v3296_v35, 2 }
 0x127   : > { %v820_v25 = vld [vmem:[#allocation3 + $0x3f] sm:$0xff]  ;;  %2434 = vmatmul.msk.f32.gmra.mxu3 %vm592_vm1, %v1003_v24 }
 0x128   : > { %v768_v26 = vld [vmem:[#allocation3 + $0x3e] sm:$0xff]  ;;  %v852_v27 = vsel %vm828_vm0, %v820_v25, 0.0  ;;  %vm1230_vm0 = vcmp.lt.s32.totalorder %v3121_v9, 6 }
 0x129   : > { %v800_v28 = vsel %vm776_vm2, %v768_v26, 0.0  ;;  %2406 = vmatmul.msk.f32.gmra.mxu1 %vm592_vm1, %v852_v27  ;;  %v1096_v54 = vld [vmem:[#allocation3 + $0x39] sm:$0xff]  ;;  %v1097_v57 = vld [vmem:[#allocation3 + $0x41] sm:$0xff]  ;;  %vm1105_vm2 = vcmp.lt.s32.totalorder %v3132_v23, 7 }
 0x12a   : > { %2414 = vmatmul.msk.f32.gmra.mxu2 %vm592_vm1, %v800_v28  ;;  %v1222_v22 = vld [vmem:[#allocation3 + $0x3a] sm:$0xff]  ;;  %v1128_v55 = vsel %vm1104_vm15, %v1096_v54, 0.0  ;;  %v1223_v46 = vld [vmem:[#allocation3 + $0x42] sm:$0xff]  ;;  %v1129_v58 = vsel %vm1105_vm2, %v1097_v57, 0.0  ;;  %vm1446_vm15 = vcmp.ge.s32.totalorder %v3296_v35, 2 }
 0x12b   : > { %v1254_v56 = vsel %vm1230_vm0, %v1222_v22, 0.0  ;;  %v1255_v59 = vsel %vm1231_vm3, %v1223_v46, 0.0  ;;  %v2495_v26 = vld [vmem:[%s3816_s5 + $0x88] sm:$0xff]  ;;  %v2507_v46 = vld [vmem:[%s3816_s5 + $0xc0] sm:$0xff] }
 0x12c   : > { %1625 = vmatpush.msrb.mxu0 %v2495_v26  ;;  %v2508_v22 = vld [vmem:[%s3816_s5 + $0xc8] sm:$0xff] }
 0x12e   : > { %1626 = vmatpush.msrb.mxu0 %v2494_v29 }
 0x130   : > { %1627 = vmatpush.msrb.mxu0 %v2493_v33 }
 0x131   : > { %2447 = vmatmul.msk.f32.vlgmr.msrb.gmra.mxu1 %vm592_vm1, %v1122_v31 }
 0x132   : > { %2467 = vmatmul.msk.f32.vlgmr.msrb.gmra.mxu2 %vm592_vm1, %v1248_v32  ;;  %v3226_v32 = vld [vmem:[%s3815_s4] ss:$0 sm:$0xff]  ;;  %1628 = vmatpush.msrb.mxu0 %v2492_v5 }
 0x136   : > { %v907_v61 = vpop.f32.mrf.mxu1 }
 0x139   : > { %2448 = vmatmul.msk.f32.gmra.mxu1 %vm592_vm1, %v1123_v36 }
 0x13a   : > { %2468 = vmatmul.msk.f32.gmra.mxu2 %vm592_vm1, %v1249_v38  ;;  %v1058_v27 = vpop.f32.mrf.mxu3 }
 0x13d   : > { %v972_v62 = vpop.f32.mrf.mxu2 }
 0x13e   : > { %v973_v24 = vadd.f32 %v972_v62, %v907_v61  ;;  %v2506_v62 = vld [vmem:[%s3816_s5 + $0xb8] sm:$0xff] }
 0x140   : > { %v1082_v28 = vadd.f32 %v1058_v27, %v973_v24 }
 0x141   : > { %2449 = vmatmul.msk.f32.gmra.mxu1 %vm592_vm1, %v1124_v40 }
 0x142   : > { %2469 = vmatmul.msk.f32.gmra.mxu2 %vm592_vm1, %v1250_v41  ;;  %v2475_v41 = vld [vmem:[%s3816_s5 + $0x38] sm:$0xff] }
 0x143   : > { %1528 = vmatpush.msrb.mxu3 %v2475_v41 }
 0x146   : > { %v910_v63 = vpop.f32.mrf.mxu1 }
 0x149   : > { %2450 = vmatmul.msk.f32.gmra.mxu1 %vm592_vm1, %v1125_v43 }
 0x14a   : > { %2470 = vmatmul.msk.f32.gmra.mxu2 %vm592_vm1, %v1251_v44  ;;  %v1061_v21 = vpop.f32.mrf.mxu3 }
 0x14d   : > { %v975_v1 = vpop.f32.mrf.mxu2 }
 0x14e   : > { %v976_v38 = vadd.f32 %v975_v1, %v910_v63  ;;  %v2518_v63 = vld [vmem:[%s3816_s5 + $0xf0] sm:$0xff] }
 0x14f   : > { %v2505_v1 = vld [vmem:[%s3816_s5 + $0xb0] sm:$0xff] }
 0x150   : > { %v1083_v44 = vadd.f32 %v1061_v21, %v976_v38 }
 0x151   : > { %2451 = vmatmul.msk.f32.gmra.mxu1 %vm592_vm1, %v1126_v47 }
 0x152   : > { %2471 = vmatmul.msk.f32.gmra.mxu2 %vm592_vm1, %v1252_v48  ;;  %v2509_v48 = vld [vmem:[%s3816_s5 + $0xd0] sm:$0xff] }
 0x153   : > { %1699 = vmatpush.msra.mxu1 %v2509_v48 }
 0x155   : > { %1700 = vmatpush.msra.mxu1 %v2508_v22 }
 0x156   : > { %v913_v3 = vpop.f32.mrf.mxu1 }
 0x157   : > { %1701 = vmatpush.msra.mxu1 %v2507_v46 }
 0x159   : > { %2452 = vmatmul.msk.f32.gmra.mxu1 %vm592_vm1, %v1127_v52 }
 0x15a   : > { %2472 = vmatmul.msk.f32.gmra.mxu2 %vm592_vm1, %v1253_v53  ;;  %v1064_v57 = vpop.f32.mrf.mxu3  ;;  %1702 = vmatpush.msra.mxu1 %v2506_v62 }
 0x15c   : > { %1703 = vmatpush.msra.mxu1 %v2505_v1 }
 0x15d   : > { %v978_v4 = vpop.f32.mrf.mxu2 }
 0x15e   : > { %v979_v52 = vadd.f32 %v978_v4, %v913_v3  ;;  %v2517_v3 = vld [vmem:[%s3816_s5 + $0xe8] sm:$0xff]  ;;  %1704 = vmatpush.msra.mxu1 %v2504_v14 }
 0x160   : > { %v1084_v61 = vadd.f32 %v1064_v57, %v979_v52 }
 0x161   : > { %2453 = vmatmul.msk.f32.gmra.mxu1 %vm592_vm1, %v1128_v55  ;;  %v2520_v55 = vld [vmem:[%s3816_s5 + $0x100] sm:$0xff] }
 0x162   : > { %2473 = vmatmul.msk.f32.gmra.mxu2 %vm592_vm1, %v1254_v56 }
 0x163   : > { %1776 = vmatpush.msra.mxu2 %v2520_v55 }
 0x166   : > { %v3175_v6 = vpop.f32.mrf.mxu1 }
 0x169   : > { %2454 = vmatmul.msk.f32.gmra.mxu1 %vm592_vm1, %v1129_v58  ;;  %v2519_v58 = vld [vmem:[%s3816_s5 + $0xf8] sm:$0xff] }
 0x16a   : > { %2474 = vmatmul.msk.f32.gmra.mxu2 %vm592_vm1, %v1255_v59  ;;  %vm1362_vm1 = vcmask 441344   ;;  %v1067_v24 = vpop.f32.mrf.mxu3 }
 0x16b   : > { %1777 = vmatpush.msra.mxu2 %v2519_v58 }
 0x16d   : > { %v3180_v8 = vpop.f32.mrf.mxu2  ;;  %1778 = vmatpush.msra.mxu2 %v2518_v63 }
 0x16e   : > { %v982_v7 = vadd.f32 %v3180_v8, %v3175_v6 }
 0x16f   : > { %1779 = vmatpush.msra.mxu2 %v2517_v3 }
 0x170   : > { %v1085_v26 = vadd.f32 %v1067_v24, %v982_v7  ;;  %v1462_v24 = vld [vmem:[%s3816_s5] sm:$0xff] }
 0x171   : > { %1780 = vmatpush.msra.mxu2 %v2516_v19 }
 0x176   : > { %v3182_v9 = vpop.f32.mrf.mxu1 }
 0x17a   : > { %v1070_v38 = vpop.f32.mrf.mxu3 }
 0x17d   : > { %v3188_v11 = vpop.f32.mrf.mxu2 }
 0x17e   : > { %v985_v30 = vadd.f32 %v3188_v11, %v3182_v9  ;;  %v1468_v9 = vld [vmem:[%s3816_s5 + $0x30] sm:$0x3f] }
 0x17f   : > { %2487 = vmatpush.msk.msra.mxu3 %vm1509_vm4, %v1468_v9 }
 0x180   : > { %v1086_v5 = vadd.f32 %v1070_v38, %v985_v30 }
 0x181   : > { %1567 = vmatpush.msra.mxu3 %v1467_v2  ;;  %v1419_v2 = vand.u32 3, %v3005_v51 }
 0x183   : > { %vm1476_vm12 = vcmp.ge.s32.totalorder %v1419_v2, 1  ;;  %vm1653_vm0 = vcmp.lt.s32.totalorder %v1419_v2, 3  ;;  %vm1729_vm2 = vcmp.lt.s32.totalorder %v1419_v2, 2 }
 0x186   : > { %v3190_v12 = vpop.f32.mrf.mxu1 }
 0x18a   : > { %v1073_v48 = vpop.f32.mrf.mxu3 }
 0x18d   : > { %v3198_v15 = vpop.f32.mrf.mxu2 }
 0x18e   : > { %v988_v21 = vadd.f32 %v3198_v15, %v3190_v12 }
 0x190   : > { %v1087_v15 = vadd.f32 %v1073_v48, %v988_v21 }
 0x196   : > { %v3200_v16 = vpop.f32.mrf.mxu1 }
 0x19a   : > { %v1076_v62 = vpop.f32.mrf.mxu3 }
 0x19d   : > { %v3202_v17 = vpop.f32.mrf.mxu2 }
 0x19e   : > { %v991_v57 = vadd.f32 %v3202_v17, %v3200_v16 }
 0x1a6   : > { %v3204_v50 = vpop.f32.mrf.mxu1 }
 0x1ad   : > { %v3212_v23 = vpop.f32.mrf.mxu2 }
 0x1ae   : > { %v1184_v25 = vpop.f32.mrf.mxu1 }
 0x1af   : > { %v1208_v31 = vadd.f32 %v1184_v25, %v1082_v28 }
 0x1b5   : > { %v1310_v36 = vpop.f32.mrf.mxu2 }
 0x1b6   : > { %v1334_v39 = vadd.f32 %v1310_v36, %v1208_v31  ;;  %v1187_v40 = vpop.f32.mrf.mxu1 }
 0x1b7   : > { %v1209_v47 = vadd.f32 %v1187_v40, %v1083_v44 }
 0x1b8   : > { %v1346_v42 = vadd.f32 %v3226_v32, %v1334_v39 }
 0x1ba   : > { %v1354_v43 = vmax.f32 %v1346_v42, 0.0 }
 0x1bc   : > { %1363 = vst.msk [vmem:[#allocation4] sm:$0xff] %vm1362_vm1, %v1354_v43 }
 0x1bd   : > { %v1313_v60 = vpop.f32.mrf.mxu2 }
 0x1be   : > { %v1335_v53 = vadd.f32 %v1313_v60, %v1209_v47  ;;  %v1190_v54 = vpop.f32.mrf.mxu1  ;;  %v1466_v47 = vld [vmem:[%s3816_s5 + $0x20] sm:$0xff] }
 0x1bf   : > { %v1210_v0 = vadd.f32 %v1190_v54, %v1084_v61  ;;  %1568 = vmatpush.msra.mxu3 %v1466_v47 }
 0x1c0   : > { %v1347_v56 = vadd.f32 %v3226_v32, %v1335_v53  ;;  %v1464_v53 = vld [vmem:[%s3816_s5 + $0x10] sm:$0xff] }
 0x1c1   : > { %1569 = vmatpush.msra.mxu3 %v1465_v49 }
 0x1c2   : > { %v1355_v59 = vmax.f32 %v1347_v56, 0.0  ;;  %v1463_v56 = vld [vmem:[%s3816_s5 + $0x8] sm:$0xff] }
 0x1c3   : > { %1570 = vmatpush.msra.mxu3 %v1464_v53 }
 0x1c4   : > { %1364 = vst.msk [vmem:[#allocation4 + $0x8] sm:$0xff] %vm1362_vm1, %v1355_v59  ;;  %v3330_v59 = vand.u32 3, %v2973_v18 }
 0x1c5   : > { %v1316_v4 = vpop.f32.mrf.mxu2  ;;  %1571 = vmatpush.msra.mxu3 %v1463_v56 }
 0x1c6   : > { %v1336_v10 = vadd.f32 %v1316_v4, %v1210_v0  ;;  %v1193_v13 = vpop.f32.mrf.mxu1  ;;  %v1088_v0 = vadd.f32 %v1076_v62, %v991_v57  ;;  %vm1474_vm6 = vcmp.ge.s32.totalorder %v3330_v59, 1  ;;  %v994_v4 = vadd.f32 %v3212_v23, %v3204_v50  ;;  %v1079_v50 = vpop.f32.mrf.mxu3  ;;  %v2540_v62 = vld [vmem:[%s3818_s7 + $0x100] sm:$0xff] }
 0x1c7   : > { %v1211_v27 = vadd.f32 %v1193_v13, %v1085_v26  ;;  %1572 = vmatpush.msra.mxu3 %v1462_v24  ;;  %vm1651_vm10 = vcmp.lt.s32.totalorder %v3330_v59, 3  ;;  %vm1727_vm11 = vcmp.lt.s32.totalorder %v3330_v59, 2  ;;  %vm1447_vm3 = vcmp.ge.s32.totalorder %v3330_v59, 2  ;;  %v2544_v59 = vld [vmem:[%s3818_s7 + $0x120] sm:$0xf]  ;;  %v2537_v24 = vld [vmem:[%s3818_s7 + $0xe8] sm:$0xff] }
 0x1c8   : > { %v1348_v20 = vadd.f32 %v3226_v32, %v1336_v10  ;;  %v1089_v26 = vadd.f32 %v1079_v50, %v994_v4  ;;  %v1834_v50 = vld [vmem:[%s3818_s7 + $0x78] sm:$0xff] }
 0x1ca   : > { %v1356_v25 = vmax.f32 %v1348_v20, 0.0 }
 0x1cb   : > { %v1371_v6 = vld [vmem:[#allocation4] ss:$2 sm:$0xff]  ;;  %v1379_v8 = vld [vmem:[#allocation4 + $0x1] ss:$2 sm:$0xff] }
 0x1cc   : > { %1365 = vst.msk [vmem:[#allocation4 + $0x10] sm:$0xff] %vm1362_vm1, %v1356_v25  ;;  %v1386_v28 = vmax.f32 %v1371_v6, %v1379_v8 }
 0x1cd   : > { %v1319_v29 = vpop.f32.mrf.mxu2 }
 0x1ce   : > { %v1337_v31 = vadd.f32 %v1319_v29, %v1211_v27  ;;  %1390 = vst.msk [vmem:[#allocation5 + $0x8] sm:$0xff] %vm1362_vm1, %v1386_v28  ;;  %v1196_v33 = vpop.f32.mrf.mxu1 }
 0x1cf   : > { %v1212_v40 = vadd.f32 %v1196_v33, %v1086_v5 }
 0x1d0   : > { %v1349_v36 = vadd.f32 %v3226_v32, %v1337_v31  ;;  %v1412_v31 = vand.u32 3, %v2989_v34 }
 0x1d2   : > { %v1357_v39 = vmax.f32 %v1349_v36, 0.0  ;;  %vm1475_vm9 = vcmp.ge.s32.totalorder %v1412_v31, 1  ;;  %vm1652_vm13 = vcmp.lt.s32.totalorder %v1412_v31, 3  ;;  %vm1728_vm14 = vcmp.lt.s32.totalorder %v1412_v31, 2 }
 0x1d3   : > { %vm1448_vm4 = vcmp.ge.s32.totalorder %v1412_v31, 2  ;;  %v1826_v31 = vld [vmem:[%s3818_s7 + $0x38] sm:$0xff] }
 0x1d4   : > { %1366 = vst.msk [vmem:[#allocation4 + $0x18] sm:$0xff] %vm1362_vm1, %v1357_v39 }
 0x1d5   : > { %v1322_v11 = vpop.f32.mrf.mxu2  ;;  %v1586_v41 = vld [vmem:[#allocation5 + $0x8] sm:$0xff] }
 0x1d6   : > { %v1469_v42 = vld [vmem:[#allocation5 + $0x7] sm:$0xff]  ;;  %v1338_v43 = vadd.f32 %v1322_v11, %v1212_v40  ;;  %2500 = vmatmul.msk.f32.vlgmr.msrb.gmra.mxu0 %vm1362_vm1, %v1586_v41  ;;  %v1199_v45 = vpop.f32.mrf.mxu1 }
 0x1d7   : > { %v1485_v44 = vsel %vm1473_vm5, %v1469_v42, 0.0  ;;  %v1213_v54 = vadd.f32 %v1199_v45, %v1087_v15  ;;  %v1442_v49 = vld [vmem:[#allocation5 + $0x6] sm:$0xff]  ;;  %vm1449_vm5 = vcmp.ge.s32.totalorder %v1419_v2, 2 }
 0x1d8   : > { %2483 = vmatmul.msk.f32.vlgmr.msrb.gmra.mxu3 %vm1362_vm1, %v1485_v44  ;;  %v1350_v37 = vadd.f32 %v3226_v32, %v1338_v43  ;;  %v1458_v15 = vsel %vm1446_vm15, %v1442_v49, 0.0  ;;  %v2539_v2 = vld [vmem:[%s3818_s7 + $0xf8] sm:$0xff] }
 0x1da   : > { %v1358_v12 = vmax.f32 %v1350_v37, 0.0 }
 0x1db   : > { %v1373_v60 = vld [vmem:[#allocation4 + $0x10] ss:$2 sm:$0xff]  ;;  %v1381_v52 = vld [vmem:[#allocation4 + $0x11] ss:$2 sm:$0xff] }
 0x1dc   : > { %1367 = vst.msk [vmem:[#allocation4 + $0x20] sm:$0xff] %vm1362_vm1, %v1358_v12  ;;  %v1387_v22 = vmax.f32 %v1373_v60, %v1381_v52 }
 0x1dd   : > { %v1325_v55 = vpop.f32.mrf.mxu2 }
 0x1de   : > { %v1339_v46 = vadd.f32 %v1325_v55, %v1213_v54  ;;  %1391 = vst.msk [vmem:[#allocation5 + $0x10] sm:$0xff] %vm1362_vm1, %v1387_v22  ;;  %v1202_v58 = vpop.f32.mrf.mxu1 }
 0x1df   : > { %v1214_v16 = vadd.f32 %v1202_v58, %v1088_v0 }
 0x1e0   : > { %v1351_v61 = vadd.f32 %v3226_v32, %v1339_v46 }
 0x1e2   : > { %v1359_v63 = vmax.f32 %v1351_v61, 0.0 }
 0x1e4   : > { %1368 = vst.msk [vmem:[#allocation4 + $0x28] sm:$0xff] %vm1362_vm1, %v1359_v63 }
 0x1e5   : > { %v1328_v17 = vpop.f32.mrf.mxu2  ;;  %v1587_v1 = vld [vmem:[#allocation5 + $0x10] sm:$0xff] }
 0x1e6   : > { %v1470_v3 = vld [vmem:[#allocation5 + $0xf] sm:$0xff]  ;;  %v1340_v7 = vadd.f32 %v1328_v17, %v1214_v16  ;;  %2501 = vmatmul.msk.f32.gmra.mxu0 %vm1362_vm1, %v1587_v1  ;;  %v1205_v23 = vpop.f32.mrf.mxu1 }
 0x1e7   : > { %v1646_v18 = vld [vmem:[#allocation5 + $0x9] sm:$0xff]  ;;  %v1486_v10 = vsel %vm1474_vm6, %v1470_v3, 0.0  ;;  %v1215_v27 = vadd.f32 %v1205_v23, %v1089_v26  ;;  %vm1868_vm6 = vcmask 1043456  }
 0x1e8   : > { %v1662_v13 = vsel %vm1650_vm7, %v1646_v18, 0.0  ;;  %v1722_v14 = vld [vmem:[#allocation5 + $0xa] sm:$0xff]  ;;  %2484 = vmatmul.msk.f32.gmra.mxu3 %vm1362_vm1, %v1486_v10  ;;  %v1352_v20 = vadd.f32 %v3226_v32, %v1340_v7  ;;  %v2545_v10 = vld [vmem:[%s3818_s7 + $0x128] sm:$0xf]  ;;  %vm2263_vm7 = vcmask 72704  }
 0x1e9   : > { %2512 = vmatmul.msk.f32.vlgmr.msra.gmra.mxu1 %vm1362_vm1, %v1662_v13  ;;  %v1738_v19 = vsel %vm1726_vm8, %v1722_v14, 0.0  ;;  %v1443_v53 = vld [vmem:[#allocation5 + $0xe] sm:$0xff]  ;;  %2548 = vmatpush.msk.msrb.mxu3 %vm1868_vm6, %v2544_v59  ;;  %v2541_v14 = vld [vmem:[%s3818_s7 + $0x108] sm:$0xff] }
 0x1ea   : > { %2524 = vmatmul.msk.f32.vlgmr.msra.gmra.mxu2 %vm1362_vm1, %v1738_v19  ;;  %v1360_v25 = vmax.f32 %v1352_v20, 0.0  ;;  %v1459_v54 = vsel %vm1447_vm3, %v1443_v53, 0.0  ;;  %v3386_v18 = vld [vmem:[%s3817_s6] ss:$0 sm:$0xff]  ;;  %2550 = vmatpush.msk.msra.mxu0 %vm1868_vm6, %v2545_v10  ;;  %v1838_v19 = vld [vmem:[%s3818_s7 + $0x98] sm:$0xf] }
 0x1eb   : > { %v1375_v6 = vld [vmem:[#allocation4 + $0x20] ss:$2 sm:$0xff]  ;;  %v1383_v8 = vld [vmem:[#allocation4 + $0x21] ss:$2 sm:$0xff]  ;;  %1893 = vmatpush.msrb.mxu3 %v2540_v62  ;;  %v2536_v7 = vld [vmem:[%s3818_s7 + $0xe0] sm:$0xff]  ;;  %2562 = vmatpush.msk.msrb.mxu1 %vm1868_vm6, %v1838_v19 }
 0x1ec   : > { %1369 = vst.msk [vmem:[#allocation4 + $0x30] sm:$0xff] %vm1362_vm1, %v1360_v25  ;;  %v1388_v28 = vmax.f32 %v1375_v6, %v1383_v8  ;;  %v2532_v13 = vld [vmem:[%s3818_s7 + $0xc0] sm:$0xff]  ;;  %1913 = vmatpush.msra.mxu0 %v2541_v14  ;;  %v1830_v26 = vld [vmem:[%s3818_s7 + $0x58] sm:$0xff]  ;;  %v2546_v6 = vld [vmem:[%s3818_s7 + $0x130] sm:$0xf] }
 0x1ed   : > { %v1331_v29 = vpop.f32.mrf.mxu2  ;;  %1894 = vmatpush.msrb.mxu3 %v2536_v7  ;;  %v2528_v23 = vld [vmem:[%s3818_s7 + $0xa0] sm:$0xff]  ;;  %2048 = vmatpush.msrb.mxu1 %v1834_v50  ;;  %v1836_v19 = vld [vmem:[%s3818_s7 + $0x88] sm:$0xf] }
 0x1ee   : > { %v1341_v30 = vadd.f32 %v1331_v29, %v1215_v27  ;;  %1392 = vst.msk [vmem:[#allocation5 + $0x18] sm:$0xff] %vm1362_vm1, %v1388_v28  ;;  %v2533_v28 = vld [vmem:[%s3818_s7 + $0xc8] sm:$0xff]  ;;  %1914 = vmatpush.msra.mxu0 %v2537_v24  ;;  %v1831_v24 = vld [vmem:[%s3818_s7 + $0x60] sm:$0xff] }
 0x1ef   : > { %1895 = vmatpush.msrb.mxu3 %v2532_v13  ;;  %2049 = vmatpush.msrb.mxu1 %v1830_v26  ;;  %v1835_v13 = vld [vmem:[%s3818_s7 + $0x80] sm:$0xf]  ;;  %v1832_v50 = vld [vmem:[%s3818_s7 + $0x68] sm:$0xff] }
 0x1f0   : > { %v1353_v33 = vadd.f32 %v3226_v32, %v1341_v30  ;;  %1915 = vmatpush.msra.mxu0 %v2533_v28  ;;  %v1828_v26 = vld [vmem:[%s3818_s7 + $0x48] sm:$0xff]  ;;  %v1819_v28 = vld [vmem:[%s3818_s7] sm:$0xff] }
 0x1f1   : > { %1896 = vmatpush.msrb.mxu3 %v2528_v23  ;;  %2050 = vmatpush.msrb.mxu1 %v1826_v31  ;;  %v2132_v23 = vld [vmem:[%s3820_s9 + $0x1d0] sm:$0xff]  ;;  %v1820_v31 = vld [vmem:[%s3818_s7 + $0x8] sm:$0xff] }
 0x1f2   : > { %v1361_v36 = vmax.f32 %v1353_v33, 0.0  ;;  %v2542_v33 = vld [vmem:[%s3818_s7 + $0x110] sm:$0xff] }
 0x1f4   : > { %1370 = vst.msk [vmem:[#allocation4 + $0x38] sm:$0xff] %vm1362_vm1, %v1361_v36 }
 0x1f5   : > { %v1588_v38 = vld [vmem:[#allocation5 + $0x18] sm:$0xff] }
 0x1f6   : > { %v1471_v39 = vld [vmem:[#allocation5 + $0x17] sm:$0xff]  ;;  %2502 = vmatmul.msk.f32.gmra.mxu0 %vm1362_vm1, %v1588_v38 }
 0x1f7   : > { %v1647_v5 = vld [vmem:[#allocation5 + $0x11] sm:$0xff]  ;;  %v1487_v40 = vsel %vm1475_vm9, %v1471_v39, 0.0 }
 0x1f8   : > { %v1663_v9 = vsel %vm1651_vm10, %v1647_v5, 0.0  ;;  %v1723_v11 = vld [vmem:[#allocation5 + $0x12] sm:$0xff]  ;;  %2485 = vmatmul.msk.f32.gmra.mxu3 %vm1362_vm1, %v1487_v40  ;;  %v2547_v40 = vld [vmem:[%s3818_s7 + $0x138] sm:$0xf] }
 0x1f9   : > { %2513 = vmatmul.msk.f32.gmra.mxu1 %vm1362_vm1, %v1663_v9  ;;  %v1739_v34 = vsel %vm1727_vm11, %v1723_v11, 0.0  ;;  %v1444_v35 = vld [vmem:[#allocation5 + $0x16] sm:$0xff]  ;;  %v1822_v9 = vld [vmem:[%s3818_s7 + $0x18] sm:$0xff] }
 0x1fa   : > { %2525 = vmatmul.msk.f32.gmra.mxu2 %vm1362_vm1, %v1739_v34  ;;  %v1460_v22 = vsel %vm1448_vm4, %v1444_v35, 0.0  ;;  %v2529_v39 = vld [vmem:[%s3818_s7 + $0xa8] sm:$0xff]  ;;  %2051 = vmatpush.msrb.mxu1 %v1822_v9  ;;  %v1821_v9 = vld [vmem:[%s3818_s7 + $0x10] sm:$0xff] }
 0x1fb   : > { %v1377_v32 = vld [vmem:[#allocation4 + $0x30] ss:$2 sm:$0xff]  ;;  %v1385_v41 = vld [vmem:[#allocation4 + $0x31] ss:$2 sm:$0xff]  ;;  %1916 = vmatpush.msra.mxu0 %v2529_v39  ;;  %v2104_v39 = vld [vmem:[%s3820_s9 + $0xf0] sm:$0xff] }
 0x1fc   : > { %v1389_v42 = vmax.f32 %v1377_v32, %v1385_v41  ;;  %v2543_v32 = vld [vmem:[%s3818_s7 + $0x118] sm:$0xff] }
 0x1fd   : > { %2554 = vmatpush.msk.msrb.mxu0 %vm1868_vm6, %v2547_v40  ;;  %v2103_v40 = vld [vmem:[%s3820_s9 + $0xe8] sm:$0xff] }
 0x1fe   : > { %1393 = vst.msk [vmem:[#allocation5 + $0x20] sm:$0xff] %vm1362_vm1, %v1389_v42  ;;  %v2538_v42 = vld [vmem:[%s3818_s7 + $0xf0] sm:$0xff] }
 0x1ff   : > { %1953 = vmatpush.msrb.mxu0 %v2543_v32  ;;  %v2101_v32 = vld [vmem:[%s3820_s9 + $0xd8] sm:$0xff] }
 0x201   : > { %1954 = vmatpush.msrb.mxu0 %v2539_v2  ;;  %v2100_v2 = vld [vmem:[%s3820_s9 + $0xd0] sm:$0xff] }
 0x205   : > { %v1589_v21 = vld [vmem:[#allocation5 + $0x20] sm:$0xff] }
 0x206   : > { %v1472_v43 = vld [vmem:[#allocation5 + $0x1f] sm:$0xff]  ;;  %2503 = vmatmul.msk.f32.gmra.mxu0 %vm1362_vm1, %v1589_v21 }
 0x207   : > { %v1648_v44 = vld [vmem:[#allocation5 + $0x19] sm:$0xff]  ;;  %v1488_v45 = vsel %vm1476_vm12, %v1472_v43, 0.0  ;;  %v1649_v51 = vld [vmem:[#allocation5 + $0x21] sm:$0xff] }
 0x208   : > { %v1664_v37 = vsel %vm1652_vm13, %v1648_v44, 0.0  ;;  %v1724_v47 = vld [vmem:[#allocation5 + $0x1a] sm:$0xff]  ;;  %2486 = vmatmul.msk.f32.gmra.mxu3 %vm1362_vm1, %v1488_v45  ;;  %v1725_v12 = vld [vmem:[#allocation5 + $0x22] sm:$0xff]  ;;  %v1665_v60 = vsel %vm1653_vm0, %v1649_v51, 0.0 }
 0x209   : > { %2514 = vmatmul.msk.f32.gmra.mxu1 %vm1362_vm1, %v1664_v37  ;;  %v1740_v48 = vsel %vm1728_vm14, %v1724_v47, 0.0  ;;  %v1741_v52 = vsel %vm1729_vm2, %v1725_v12, 0.0  ;;  %v1445_v55 = vld [vmem:[#allocation5 + $0x1e] sm:$0xff]  ;;  %v2535_v47 = vld [vmem:[%s3818_s7 + $0xd8] sm:$0xff] }
 0x20a   : > { %2526 = vmatmul.msk.f32.gmra.mxu2 %vm1362_vm1, %v1740_v48  ;;  %v1461_v56 = vsel %vm1449_vm5, %v1445_v55, 0.0  ;;  %v2534_v21 = vld [vmem:[%s3818_s7 + $0xd0] sm:$0xff]  ;;  %1955 = vmatpush.msrb.mxu0 %v2535_v47  ;;  %v2098_v47 = vld [vmem:[%s3820_s9 + $0xc0] sm:$0xff] }
 0x20b   : > { %v2530_v48 = vld [vmem:[%s3818_s7 + $0xb0] sm:$0xff] }
 0x210   : > { %2488 = vmatmul.msk.f32.vlgmr.msra.gmra.mxu3 %vm1362_vm1, %v1458_v15  ;;  %v2531_v15 = vld [vmem:[%s3818_s7 + $0xb8] sm:$0xff] }
 0x211   : > { %2515 = vmatmul.msk.f32.gmra.mxu1 %vm1362_vm1, %v1665_v60  ;;  %2552 = vmatpush.msk.msra.mxu3 %vm1868_vm6, %v2546_v6  ;;  %v2131_v6 = vld [vmem:[%s3820_s9 + $0x1c8] sm:$0xff] }
 0x212   : > { %2527 = vmatmul.msk.f32.gmra.mxu2 %vm1362_vm1, %v1741_v52  ;;  %1956 = vmatpush.msrb.mxu0 %v2531_v15  ;;  %v2120_v15 = vld [vmem:[%s3820_s9 + $0x170] sm:$0xff] }
 0x213   : > { %1933 = vmatpush.msra.mxu3 %v2542_v33  ;;  %v1833_v33 = vld [vmem:[%s3818_s7 + $0x70] sm:$0xff] }
 0x215   : > { %1934 = vmatpush.msra.mxu3 %v2538_v42  ;;  %v2087_v42 = vld [vmem:[%s3820_s9 + $0x68] sm:$0xff] }
 0x217   : > { %1935 = vmatpush.msra.mxu3 %v2534_v21  ;;  %v2128_v21 = vld [vmem:[%s3820_s9 + $0x1b0] sm:$0xff] }
 0x218   : > { %2489 = vmatmul.msk.f32.gmra.mxu3 %vm1362_vm1, %v1459_v54 }
 0x219   : > { %1936 = vmatpush.msra.mxu3 %v2530_v48  ;;  %v2121_v48 = vld [vmem:[%s3820_s9 + $0x178] sm:$0xff] }
 0x220   : > { %2490 = vmatmul.msk.f32.gmra.mxu3 %vm1362_vm1, %v1460_v22 }
 0x228   : > { %2491 = vmatmul.msk.f32.gmra.mxu3 %vm1362_vm1, %v1461_v56  ;;  %vm1810_vm1 = vcmask 293888  }
 0x253   : > { %v1630_v16 = vpop.f32.mrf.mxu0 }
 0x25b   : > { %v1530_v57 = vpop.f32.mrf.mxu3 }
 0x263   : > { %v1633_v29 = vpop.f32.mrf.mxu0 }
 0x266   : > { %v1706_v17 = vpop.f32.mrf.mxu1 }
 0x26b   : > { %v1533_v46 = vpop.f32.mrf.mxu3 }
 0x26d   : > { %v1782_v3 = vpop.f32.mrf.mxu2 }
 0x273   : > { %v1636_v45 = vpop.f32.mrf.mxu0 }
 0x276   : > { %v1709_v30 = vpop.f32.mrf.mxu1 }
 0x27b   : > { %v3372_v58 = vpop.f32.mrf.mxu3 }
 0x27d   : > { %v1785_v5 = vpop.f32.mrf.mxu2 }
 0x283   : > { %v1639_v22 = vpop.f32.mrf.mxu0 }
 0x286   : > { %v1712_v37 = vpop.f32.mrf.mxu1 }
 0x28b   : > { %v3378_v61 = vpop.f32.mrf.mxu3 }
 0x28d   : > { %v1788_v12 = vpop.f32.mrf.mxu2 }
 0x293   : > { %v1574_v63 = vpop.f32.mrf.mxu3 }
 0x294   : > { %v1575_v0 = vadd.f32 %v1574_v63, %v1530_v57  ;;  %v1715_v57 = vpop.f32.mrf.mxu1 }
 0x296   : > { %v1642_v1 = vadd.f32 %v1630_v16, %v1575_v0  ;;  %v2137_v0 = vld [vmem:[%s3820_s9 + $0x1f8] sm:$0xff]  ;;  %v2135_v16 = vld [vmem:[%s3820_s9 + $0x1e8] sm:$0xff] }
 0x297   : > { %2202 = vmatpush.msra.mxu1 %v2137_v0  ;;  %v2093_v0 = vld [vmem:[%s3820_s9 + $0x98] sm:$0xff] }
 0x298   : > { %v1718_v4 = vadd.f32 %v1706_v17, %v1642_v1  ;;  %v2089_v17 = vld [vmem:[%s3820_s9 + $0x78] sm:$0xff]  ;;  %v2134_v1 = vld [vmem:[%s3820_s9 + $0x1e0] sm:$0xff] }
 0x299   : > { %2142 = vmatpush.msrb.mxu2 %v2089_v17  ;;  %v2092_v17 = vld [vmem:[%s3820_s9 + $0x90] sm:$0xff] }
 0x29a   : > { %v1794_v20 = vadd.f32 %v1782_v3, %v1718_v4 }
 0x29b   : > { %v1577_v25 = vpop.f32.mrf.mxu3 }
 0x29c   : > { %v1802_v8 = vadd.f32 %v3386_v18, %v1794_v20  ;;  %v1578_v27 = vadd.f32 %v1577_v25, %v1533_v46  ;;  %v2133_v20 = vld [vmem:[%s3820_s9 + $0x1d8] sm:$0xff]  ;;  %v1827_v25 = vld [vmem:[%s3818_s7 + $0x40] sm:$0xff] }
 0x29e   : > { %v1806_v36 = vmax.f32 %v1802_v8, 0.0  ;;  %v1643_v38 = vadd.f32 %v1633_v29, %v1578_v27  ;;  %v1823_v8 = vld [vmem:[%s3818_s7 + $0x20] sm:$0xff]  ;;  %v1824_v27 = vld [vmem:[%s3818_s7 + $0x28] sm:$0xff]  ;;  %v1837_v29 = vld [vmem:[%s3818_s7 + $0x90] sm:$0xf] }
 0x2a0   : > { %1811 = vst.msk [vmem:[#allocation6] sm:$0xff] %vm1810_vm1, %v1806_v36  ;;  %v1719_v11 = vadd.f32 %v1709_v30, %v1643_v38  ;;  %v2130_v30 = vld [vmem:[%s3820_s9 + $0x1c0] sm:$0xff]  ;;  %v2105_v36 = vld [vmem:[%s3820_s9 + $0xf8] sm:$0xff]  ;;  %v1829_v38 = vld [vmem:[%s3818_s7 + $0x50] sm:$0xff] }
 0x2a2   : > { %v1795_v34 = vadd.f32 %v1785_v5, %v1719_v11  ;;  %v1825_v5 = vld [vmem:[%s3818_s7 + $0x30] sm:$0xff]  ;;  %v2102_v11 = vld [vmem:[%s3820_s9 + $0xe0] sm:$0xff] }
 0x2a3   : > { %v1580_v41 = vpop.f32.mrf.mxu3 }
 0x2a4   : > { %v1803_v43 = vadd.f32 %v3386_v18, %v1795_v34  ;;  %v1581_v44 = vadd.f32 %v1580_v41, %v3372_v58  ;;  %v1791_v58 = vpop.f32.mrf.mxu2  ;;  %v2088_v34 = vld [vmem:[%s3820_s9 + $0x70] sm:$0xff]  ;;  %v2129_v41 = vld [vmem:[%s3820_s9 + $0x1b8] sm:$0xff] }
 0x2a5   : > { %2143 = vmatpush.msrb.mxu2 %v2088_v34 }
 0x2a6   : > { %v1807_v49 = vmax.f32 %v1803_v43, 0.0  ;;  %v1644_v51 = vadd.f32 %v1636_v45, %v1581_v44  ;;  %v2086_v43 = vld [vmem:[%s3820_s9 + $0x60] sm:$0xff]  ;;  %v2099_v44 = vld [vmem:[%s3820_s9 + $0xc8] sm:$0xff] }
 0x2a7   : > { %2144 = vmatpush.msrb.mxu2 %v2087_v42  ;;  %v2127_v45 = vld [vmem:[%s3820_s9 + $0x1a8] sm:$0xff] }
 0x2a8   : > { %1812 = vst.msk [vmem:[#allocation6 + $0x8] sm:$0xff] %vm1810_vm1, %v1807_v49  ;;  %v1720_v60 = vadd.f32 %v1712_v37, %v1644_v51  ;;  %v2085_v37 = vld [vmem:[%s3820_s9 + $0x58] sm:$0xff]  ;;  %v2126_v49 = vld [vmem:[%s3820_s9 + $0x1a0] sm:$0xff]  ;;  %v2084_v51 = vld [vmem:[%s3820_s9 + $0x50] sm:$0xff] }
 0x2a9   : > { %2145 = vmatpush.msrb.mxu2 %v2086_v43 }
 0x2aa   : > { %v1796_v52 = vadd.f32 %v1788_v12, %v1720_v60  ;;  %v2097_v12 = vld [vmem:[%s3820_s9 + $0xb8] sm:$0xff] }
 0x2ab   : > { %v1583_v53 = vpop.f32.mrf.mxu3  ;;  %2146 = vmatpush.msrb.mxu2 %v2085_v37  ;;  %v2125_v60 = vld [vmem:[%s3820_s9 + $0x198] sm:$0xff] }
 0x2ac   : > { %v1804_v54 = vadd.f32 %v3386_v18, %v1796_v52  ;;  %v1584_v35 = vadd.f32 %v1583_v53, %v3378_v61  ;;  %v2136_v61 = vld [vmem:[%s3820_s9 + $0x1f0] sm:$0xff]  ;;  %v2083_v52 = vld [vmem:[%s3820_s9 + $0x48] sm:$0xff] }
 0x2ad   : > { %2203 = vmatpush.msra.mxu1 %v2136_v61  ;;  %2147 = vmatpush.msrb.mxu2 %v2084_v51  ;;  %v2096_v53 = vld [vmem:[%s3820_s9 + $0xb0] sm:$0xff] }
 0x2ae   : > { %v1808_v55 = vmax.f32 %v1804_v54, 0.0  ;;  %v1645_v56 = vadd.f32 %v1639_v22, %v1584_v35  ;;  %v2119_v54 = vld [vmem:[%s3820_s9 + $0x168] sm:$0xff]  ;;  %v2124_v35 = vld [vmem:[%s3820_s9 + $0x190] sm:$0xff]  ;;  %v2082_v22 = vld [vmem:[%s3820_s9 + $0x40] sm:$0xff] }
 0x2af   : > { %2204 = vmatpush.msra.mxu1 %v2135_v16  ;;  %2148 = vmatpush.msrb.mxu2 %v2083_v52  ;;  %v2116_v61 = vld [vmem:[%s3820_s9 + $0x150] sm:$0xff]  ;;  %v2079_v16 = vld [vmem:[%s3820_s9 + $0x28] sm:$0xff] }
 0x2b0   : > { %1813 = vst.msk [vmem:[#allocation6 + $0x10] sm:$0xff] %vm1810_vm1, %v1808_v55  ;;  %v1721_v46 = vadd.f32 %v1715_v57, %v1645_v56  ;;  %v2095_v55 = vld [vmem:[%s3820_s9 + $0xa8] sm:$0xff]  ;;  %v2118_v56 = vld [vmem:[%s3820_s9 + $0x160] sm:$0xff]  ;;  %v2237_v51 = vld [vmem:[%s3822_s11 + $0x70] sm:$0xff] }
 0x2b1   : > { %2205 = vmatpush.msra.mxu1 %v2134_v1  ;;  %v2123_v57 = vld [vmem:[%s3820_s9 + $0x188] sm:$0xff]  ;;  %2149 = vmatpush.msrb.mxu2 %v2082_v22  ;;  %v2233_v52 = vld [vmem:[%s3822_s11 + $0x50] sm:$0xff] }
 0x2b2   : > { %v1797_v59 = vadd.f32 %v1791_v58, %v1721_v46  ;;  %v2081_v46 = vld [vmem:[%s3820_s9 + $0x38] sm:$0xff]  ;;  %v2094_v58 = vld [vmem:[%s3820_s9 + $0xa0] sm:$0xff]  ;;  %v2115_v1 = vld [vmem:[%s3820_s9 + $0x148] sm:$0xff] }
 0x2b3   : > { %2206 = vmatpush.msra.mxu1 %v2133_v20  ;;  %2150 = vmatpush.msrb.mxu2 %v2081_v46  ;;  %v2075_v20 = vld [vmem:[%s3820_s9 + $0x8] sm:$0xff]  ;;  %v2229_v22 = vld [vmem:[%s3822_s11 + $0x30] sm:$0xff] }
 0x2b4   : > { %v1805_v62 = vadd.f32 %v3386_v18, %v1797_v59  ;;  %v2117_v59 = vld [vmem:[%s3820_s9 + $0x158] sm:$0xff]  ;;  %v2225_v46 = vld [vmem:[%s3822_s11 + $0x10] sm:$0xff] }
 0x2b5   : > { %2207 = vmatpush.msra.mxu1 %v2132_v23  ;;  %v2110_v23 = vld [vmem:[%s3820_s9 + $0x120] sm:$0xff] }
 0x2b6   : > { %v1809_v63 = vmax.f32 %v1805_v62, 0.0  ;;  %v2122_v62 = vld [vmem:[%s3820_s9 + $0x180] sm:$0xff] }
 0x2b7   : > { %2208 = vmatpush.msra.mxu1 %v2131_v6  ;;  %v2108_v6 = vld [vmem:[%s3820_s9 + $0x110] sm:$0xff] }
 0x2b8   : > { %1814 = vst.msk [vmem:[#allocation6 + $0x18] sm:$0xff] %vm1810_vm1, %v1809_v63  ;;  %v2080_v63 = vld [vmem:[%s3820_s9 + $0x30] sm:$0xff] }
 0x2b9   : > { %2209 = vmatpush.msra.mxu1 %v2130_v30  ;;  %2151 = vmatpush.msrb.mxu2 %v2080_v63 }
 0x2bb   : > { %2210 = vmatpush.msra.mxu1 %v2129_v41  ;;  %2152 = vmatpush.msrb.mxu2 %v2079_v16 }
 0x2bd   : > { %2211 = vmatpush.msra.mxu1 %v2128_v21 }
 0x2bf   : > { %v1840_v3 = vld [vmem:[#allocation6 + $0x2] ss:$4 sm:$0xff]  ;;  %v1842_v18 = vld [vmem:[#allocation6 + $0x3] ss:$4 sm:$0xff]  ;;  %v1815_v4 = vld [vmem:[#allocation6] ss:$4 sm:$0xff]  ;;  %2212 = vmatpush.msra.mxu1 %v2127_v45 }
 0x2c0   : > { %v1843_v7 = vmax.f32 %v1840_v3, %v1842_v18  ;;  %v1817_v10 = vld [vmem:[#allocation6 + $0x1] ss:$4 sm:$0xff] }
 0x2c1   : > { %v1818_v14 = vmax.f32 %v1815_v4, %v1817_v10  ;;  %2213 = vmatpush.msra.mxu1 %v2126_v49  ;;  %v2078_v3 = vld [vmem:[%s3820_s9 + $0x20] sm:$0xff]  ;;  %v2091_v18 = vld [vmem:[%s3820_s9 + $0x88] sm:$0xff]  ;;  %v2238_v49 = vld [vmem:[%s3822_s11 + $0x78] sm:$0xff] }
 0x2c2   : > { %2549 = vmatmul.msk.f32.vlgmr.msrb.gmra.mxu3 %vm1810_vm1, %v1843_v7  ;;  %2551 = vmatmul.msk.f32.vlgmr.msra.gmra.mxu0 %vm1810_vm1, %v1843_v7  ;;  %v2114_v4 = vld [vmem:[%s3820_s9 + $0x140] sm:$0xff] }
 0x2c3   : > { %2563 = vmatmul.msk.f32.vlgmr.msrb.gmra.mxu1 %vm1810_vm1, %v1818_v14  ;;  %2556 = vmatpush.msk.msrb.mxu3 %vm1868_vm6, %v1835_v13  ;;  %v2090_v10 = vld [vmem:[%s3820_s9 + $0x80] sm:$0xff]  ;;  %v2113_v13 = vld [vmem:[%s3820_s9 + $0x138] sm:$0xff] }
 0x2c4   : > { %2558 = vmatpush.msk.msra.mxu0 %vm1868_vm6, %v1836_v19  ;;  %2214 = vmatpush.msra.mxu1 %v2125_v60  ;;  %v2112_v19 = vld [vmem:[%s3820_s9 + $0x130] sm:$0xff]  ;;  %v2234_v60 = vld [vmem:[%s3822_s11 + $0x58] sm:$0xff] }
 0x2c5   : > { %1988 = vmatpush.msrb.mxu3 %v1831_v24  ;;  %2153 = vmatpush.msrb.mxu2 %v2078_v3  ;;  %v2111_v24 = vld [vmem:[%s3820_s9 + $0x128] sm:$0xff] }
 0x2c6   : > { %2008 = vmatpush.msra.mxu0 %v1832_v50  ;;  %2215 = vmatpush.msra.mxu1 %v2124_v35  ;;  %v2074_v50 = vld [vmem:[%s3820_s9] sm:$0xff]  ;;  %v2230_v35 = vld [vmem:[%s3822_s11 + $0x38] sm:$0xff] }
 0x2c7   : > { %1989 = vmatpush.msrb.mxu3 %v1827_v25 }
 0x2c8   : > { %2009 = vmatpush.msra.mxu0 %v1828_v26  ;;  %2216 = vmatpush.msra.mxu1 %v2123_v57  ;;  %v2109_v26 = vld [vmem:[%s3820_s9 + $0x118] sm:$0xff] }
 0x2c9   : > { %1990 = vmatpush.msrb.mxu3 %v1823_v8  ;;  %v2107_v8 = vld [vmem:[%s3820_s9 + $0x108] sm:$0xff]  ;;  %v2226_v57 = vld [vmem:[%s3822_s11 + $0x18] sm:$0xff] }
 0x2ca   : > { %2553 = vmatmul.msk.f32.vlgmr.msra.gmra.mxu3 %vm1810_vm1, %v1843_v7  ;;  %2555 = vmatmul.msk.f32.vlgmr.msrb.gmra.mxu0 %vm1810_vm1, %v1843_v7  ;;  %v2077_v7 = vld [vmem:[%s3820_s9 + $0x18] sm:$0xff] }
 0x2cb   : > { %2010 = vmatpush.msra.mxu0 %v1824_v27  ;;  %1991 = vmatpush.msrb.mxu3 %v1819_v28  ;;  %v2056_v27 = vld [vmem:[%s3819_s8] sm:$0xf] }
 0x2cc   : > { %2217 = vmatpush.msra.mxu1 %v2122_v62  ;;  %2154 = vmatpush.msrb.mxu2 %v2077_v7  ;;  %v2106_v28 = vld [vmem:[%s3820_s9 + $0x100] sm:$0xff]  ;;  %v2061_v30 = vperm.slane %v2056_v27, 3  ;;  %v2058_v41 = vperm.slane %v2056_v27, 0 }
 0x2cd   : > { %2560 = vmatpush.msk.msra.mxu3 %vm1868_vm6, %v1837_v29  ;;  %2011 = vmatpush.msra.mxu0 %v1820_v31  ;;  %v2610_v62 = vld [vmem:[%s3821_s10] ss:$0 sm:$0xff] }
 0x2ce   : > { %v2611_v7 = vld [vmem:[%s3823_s12] ss:$0 sm:$0xff] }
 0x2cf   : > { %2028 = vmatpush.msra.mxu3 %v1833_v33  ;;  %2162 = vmatpush.msrb.mxu0 %v2105_v36 }
 0x2d1   : > { %2029 = vmatpush.msra.mxu3 %v1829_v38  ;;  %2163 = vmatpush.msrb.mxu0 %v2104_v39 }
 0x2d2   : > { %2557 = vmatmul.msk.f32.vlgmr.msrb.gmra.mxu3 %vm1810_vm1, %v1818_v14  ;;  %2559 = vmatmul.msk.f32.vlgmr.msra.gmra.mxu0 %vm1810_vm1, %v1818_v14 }
 0x2d3   : > { %2030 = vmatpush.msra.mxu3 %v1825_v5  ;;  %2164 = vmatpush.msrb.mxu0 %v2103_v40  ;;  %v2059_v40 = vperm.slane %v2056_v27, 1 }
 0x2d5   : > { %2031 = vmatpush.msra.mxu3 %v1821_v9  ;;  %2165 = vmatpush.msrb.mxu0 %v2102_v11 }
 0x2d7   : > { %2166 = vmatpush.msrb.mxu0 %v2101_v32  ;;  %2182 = vmatpush.msrb.mxu3 %v2121_v48 }
 0x2d9   : > { %2167 = vmatpush.msrb.mxu0 %v2100_v2  ;;  %2183 = vmatpush.msrb.mxu3 %v2120_v15  ;;  %v2235_v15 = vld [vmem:[%s3822_s11 + $0x60] sm:$0xff] }
 0x2da   : > { %2561 = vmatmul.msk.f32.vlgmr.msra.gmra.mxu3 %vm1810_vm1, %v1818_v14  ;;  %v2076_v14 = vld [vmem:[%s3820_s9 + $0x10] sm:$0xff] }
 0x2db   : > { %2168 = vmatpush.msrb.mxu0 %v2099_v44  ;;  %2184 = vmatpush.msrb.mxu3 %v2119_v54  ;;  %v2060_v44 = vperm.slane %v2056_v27, 2  ;;  %v2231_v54 = vld [vmem:[%s3822_s11 + $0x40] sm:$0xff] }
 0x2dc   : > { %2155 = vmatpush.msrb.mxu2 %v2076_v14 }
 0x2dd   : > { %2169 = vmatpush.msrb.mxu0 %v2098_v47  ;;  %2185 = vmatpush.msrb.mxu3 %v2118_v56  ;;  %v2227_v56 = vld [vmem:[%s3822_s11 + $0x20] sm:$0xff] }
 0x2de   : > { %2156 = vmatpush.msrb.mxu2 %v2075_v20 }
 0x2df   : > { %2170 = vmatpush.msrb.mxu0 %v2097_v12  ;;  %2186 = vmatpush.msrb.mxu3 %v2117_v59  ;;  %v2236_v12 = vld [vmem:[%s3822_s11 + $0x68] sm:$0xff]  ;;  %v2223_v59 = vld [vmem:[%s3822_s11] sm:$0xff] }
 0x2e0   : > { %2157 = vmatpush.msrb.mxu2 %v2074_v50 }
 0x2e1   : > { %2171 = vmatpush.msrb.mxu0 %v2096_v53  ;;  %2187 = vmatpush.msrb.mxu3 %v2116_v61  ;;  %v2232_v53 = vld [vmem:[%s3822_s11 + $0x48] sm:$0xff] }
 0x2e2   : > { %2243 = vmatpush.msra.mxu2 %v2238_v49 }
 0x2e3   : > { %2172 = vmatpush.msrb.mxu0 %v2095_v55  ;;  %2188 = vmatpush.msrb.mxu3 %v2115_v1  ;;  %v2228_v55 = vld [vmem:[%s3822_s11 + $0x28] sm:$0xff] }
 0x2e4   : > { %2244 = vmatpush.msra.mxu2 %v2237_v51 }
 0x2e5   : > { %2173 = vmatpush.msrb.mxu0 %v2094_v58  ;;  %2189 = vmatpush.msrb.mxu3 %v2114_v4  ;;  %v2224_v58 = vld [vmem:[%s3822_s11 + $0x8] sm:$0xff] }
 0x2e6   : > { %2245 = vmatpush.msra.mxu2 %v2236_v12 }
 0x2e7   : > { %2174 = vmatpush.msrb.mxu0 %v2093_v0  ;;  %2190 = vmatpush.msrb.mxu3 %v2113_v13 }
 0x2e8   : > { %2246 = vmatpush.msra.mxu2 %v2235_v15 }
 0x2e9   : > { %2175 = vmatpush.msrb.mxu0 %v2092_v17  ;;  %2191 = vmatpush.msrb.mxu3 %v2112_v19 }
 0x2ea   : > { %2247 = vmatpush.msra.mxu2 %v2234_v60 }
 0x2eb   : > { %2176 = vmatpush.msrb.mxu0 %v2091_v18  ;;  %2192 = vmatpush.msrb.mxu3 %v2111_v24 }
 0x2ec   : > { %2248 = vmatpush.msra.mxu2 %v2233_v52 }
 0x2ed   : > { %2177 = vmatpush.msrb.mxu0 %v2090_v10  ;;  %2193 = vmatpush.msrb.mxu3 %v2110_v23 }
 0x2ee   : > { %2249 = vmatpush.msra.mxu2 %v2232_v53 }
 0x2ef   : > { %2194 = vmatpush.msrb.mxu3 %v2109_v26 }
 0x2f0   : > { %2250 = vmatpush.msra.mxu2 %v2231_v54 }
 0x2f1   : > { %2195 = vmatpush.msrb.mxu3 %v2108_v6 }
 0x2f2   : > { %2251 = vmatpush.msra.mxu2 %v2230_v35 }
 0x2f3   : > { %2196 = vmatpush.msrb.mxu3 %v2107_v8 }
 0x2f4   : > { %2252 = vmatpush.msra.mxu2 %v2229_v22 }
 0x2f5   : > { %2197 = vmatpush.msrb.mxu3 %v2106_v28 }
 0x2f6   : > { %2253 = vmatpush.msra.mxu2 %v2228_v55 }
 0x2f8   : > { %2254 = vmatpush.msra.mxu2 %v2227_v56 }
 0x2fa   : > { %2255 = vmatpush.msra.mxu2 %v2226_v57 }
 0x2fc   : > { %2256 = vmatpush.msra.mxu2 %v2225_v46 }
 0x2fe   : > { %2257 = vmatpush.msra.mxu2 %v2224_v58 }
 0x300   : > { %2258 = vmatpush.msra.mxu2 %v2223_v59 }
 0x33f   : > { %v1918_v25 = vpop.f32.mrf.mxu0 }
 0x340   : > { %v2053_v31 = vpop.f32.mrf.mxu1 }
 0x345   : > { %v1898_v29 = vpop.f32.mrf.mxu3 }
 0x347   : > { %v1958_v33 = vpop.f32.mrf.mxu0 }
 0x348   : > { %v2054_v36 = vadd.f32 %v2053_v31, %v1958_v33 }
 0x34a   : > { %v2069_v38 = vadd.f32 %v2061_v30, %v2054_v36 }
 0x34c   : > { %v2073_v39 = vmax.f32 %v2069_v38, 0.0 }
 0x34d   : > { %v1938_v5 = vpop.f32.mrf.mxu3 }
 0x34e   : > { %2218 = vmatmul.f32.vlgmr.msra.gmra.mxu1 %v2073_v39 }
 0x34f   : > { %v2013_v9 = vpop.f32.mrf.mxu0 }
 0x350   : > { %v2014_v11 = vadd.f32 %v2013_v9, %v1918_v25 }
 0x352   : > { %v2067_v34 = vadd.f32 %v2059_v40, %v2014_v11 }
 0x354   : > { %v2071_v32 = vmax.f32 %v2067_v34, 0.0 }
 0x355   : > { %v1993_v42 = vpop.f32.mrf.mxu3 }
 0x356   : > { %v1994_v2 = vadd.f32 %v1993_v42, %v1898_v29  ;;  %2178 = vmatmul.f32.vlgmr.msrb.gmra.mxu0 %v2071_v32 }
 0x358   : > { %v2066_v21 = vadd.f32 %v2058_v41, %v1994_v2 }
 0x35a   : > { %v2070_v43 = vmax.f32 %v2066_v21, 0.0 }
 0x35c   : > { %2158 = vmatmul.f32.vlgmr.msrb.gmra.mxu2 %v2070_v43 }
 0x35d   : > { %v2033_v45 = vpop.f32.mrf.mxu3 }
 0x35e   : > { %v2034_v37 = vadd.f32 %v2033_v45, %v1938_v5 }
 0x360   : > { %v2068_v47 = vadd.f32 %v2060_v44, %v2034_v37 }
 0x362   : > { %v2072_v48 = vmax.f32 %v2068_v47, 0.0 }
 0x364   : > { %2198 = vmatmul.f32.vlgmr.msrb.gmra.mxu3 %v2072_v48 }
 0x3cb   : > { %v2219_v3 = vpop.f32.mrf.mxu1 }
 0x3d3   : > { %v2179_v61 = vpop.f32.mrf.mxu0 }
 0x3df   : > { %v2159_v63 = vpop.f32.mrf.mxu2 }
 0x3e0   : > { %v2160_v0 = vadd.f32 %v2610_v62, %v2159_v63 }
 0x3e2   : > { %v2180_v16 = vadd.f32 %v2179_v61, %v2160_v0 }
 0x3e7   : > { %v2199_v17 = vpop.f32.mrf.mxu3 }
 0x3e8   : > { %v2200_v1 = vadd.f32 %v2199_v17, %v2180_v16 }
 0x3ea   : > { %v2220_v18 = vadd.f32 %v2219_v3, %v2200_v1 }
 0x3ec   : > { %v2222_v4 = vmax.f32 %v2220_v18, 0.0 }
 0x3ee   : > { %2259 = vmatmul.f32.vlgmr.msra.gmra.mxu2 %v2222_v4 }
 0x471   : > { %v2260_v10 = vpop.f32.mrf.mxu2 }
 0x472   : > { %v2261_v13 = vadd.f32 %v2611_v7, %v2260_v10 }
 0x474   : > { %v2264_v14 = vsel %vm2263_vm7, %v2261_v13, -inf }
 0x475   : > { %2265 = vmax.xlane.f32.xlu0 %v2264_v14 }
 0x4e8   : > { %v2266_v19 = vpop.xlane.xlu0 %2265 }
 0x4e9   : > { %v2267_v20 = vsub.f32 %v2261_v13, %v2266_v19 }
 0x4eb   : > { %v2268_v24 = vmul.f32 1.442695, %v2267_v20 }
 0x4ed   : > { %2612 = vpow2.f32 %v2268_v24 }
 0x4f3   : > { %v2613_v50 = vpop.eup %2612 }
 0x4f4   : > { %v2270_v23 = vsel %vm2263_vm7, %v2613_v50, 0.0 }
 0x4f5   : > { %2271 = vadd.xlane.f32.xlu0 %v2270_v23 }
 0x568   : > { %v2272_v25 = vpop.xlane.xlu0 %2271 }
 0x569   : > { %2614 = vrcp.f32 %v2272_v25  ;;  %v2284_v27 = vand.u32 2147483648, %v2272_v25  ;;  %v2282_v29 = vand.u32 2147483647, %v2272_v25  ;;  %vm2278_vm9 = vweird.f32 %v2272_v25 }
 0x56b   : > { %v2285_v31 = vor.u32 1.1754944e-38, %v2284_v27  ;;  %vm2283_vm11 = vcmp.eq.f32.partialorder %v2282_v29, 8.507059e+37 }
 0x56f   : > { %v2615_v26 = vpop.eup %2614 }
 0x570   : > { %v2274_v6 = vmul.f32 %v2615_v26, %v2272_v25  ;;  %vm2279_vm8 = vweird.f32 %v2615_v26 }
 0x571   : > { %vm2280_vm10 = vmor %vm2278_vm9, %vm2279_vm8 }
 0x572   : > { %v2275_v8 = vsub.f32 1.0, %v2274_v6 }
 0x574   : > { %v2276_v28 = vmul.f32 %v2615_v26, %v2275_v8 }
 0x576   : > { %v2277_v30 = vadd.f32 %v2615_v26, %v2276_v28 }
 0x578   : > { %v2281_v33 = vsel %vm2280_vm10, %v2615_v26, %v2277_v30 }
 0x579   : > { %v2286_v36 = vsel %vm2283_vm11, %v2285_v31, %v2281_v33 }
 0x57a   : > { %v2287_v38 = vmul.f32 %v2613_v50, %v2286_v36 }
 0x57c   : > { %2288 = vst.msk [vmem:[%s434_s21] sm:$0xff] %vm2263_vm7, %v2287_v38 }
 0x57d   : > { %2643 = shalt.err (!%p2640_p3)
}
 0x57e   : > { %2568 = dma.vmem_to_hbm [thread:$0]  (%p2788_p5), %s2303_s22, 128, %s2305_s0, %s2290_s29  }
 0x57f PF: > { %p2574_p4 = scmp.ge.s32.totalorder %s2678_s28, 2  ;;  %s2316_s24 = sand.u32 1, %s2666_s25  }
 0x580   : > { %s2317_s21 = scalar_lea.sflag [#allocation8], %s2316_s24 }
 0x581   : > { %p2571_p7 = pnand %p2574_p4, %p2792_p6 }
 0x583   : > { %p2572_p8 = pneg %p2571_p7 }
 0x585   : > { %2661 = dma.done.wait (%p2572_p8), %s2317_s21, 128  }
 0x586   : > { %2663 = vsyncadd (%p2572_p8), %s2317_s21, 4294967168  ;;  %s3832_s23 = sld [smem:[#allocation10_spill]]  ;;  %p23_p9 = scmp.ge.s32.totalorder %s2775_s14, 4  }
 0x587   : > { %s3833_s25 = smov %s2670_s26  ;;  %s3834_s26 = smov %s2674_s27 }
 0x588   : > { %s3836_s28 = smov %s2775_s14  ;;  %25 = sbr.rel (!%p23_p9) target bundleno = 6 (0x6), region = 141 }
 0x58c   : > { %s3835_s27 = smov %s3832_s23 }
 0x58d   :  { %2323 = vsyncpa [#allocation8], 1 }
 0x58e   :  { %2325 = vsyncpa [#allocation8 + $0x1], 1 }

</bundles_post_ra>
